<compile_context>
chip_gen: v6e
topology: v6e:2x2x1
jax: 0.10.0
libtpu: 0.0.40
codegen_flags: <defaults>
</compile_context>

<pallas_src>
import numpy as np
import jax
import jax.numpy as jnp
from jax.experimental import pallas as pl
from jax.experimental.pallas import tpu as pltpu

# ---- scaled-down module hyper-parameters ----
d_k = d_v = 32
d_model = 128
n_heads = 4
HK = n_heads * d_k           # 128
SEQ = 16
BATCH = 2
LN_EPS = 1e-5
NEG_INF = -1e9


# ------------------------------ kernel ---------------------------------------
def mha_kernel(q_ref, k_ref, v_ref, wqkv_ref, bqkv_ref, wo_ref, bo_ref, bias_ref,
               out_ref, attn_ref):
    f32, bf16 = jnp.float32, jnp.bfloat16

    xq = q_ref[0]                         # [S, D] f32 (also the residual)
    xk = k_ref[0]                         # [S, D] bf16
    xv = v_ref[0]                         # [S, D] bf16
    bias = bias_ref[0]                    # [S, S] f32 additive mask (-1e9 masked)

    # ---- fused lane-dense projections: one [S,D]@[D,HK] matmul each ----------
    xq_bf = xq.astype(bf16)
    q_all = (jnp.dot(xq_bf, wqkv_ref[:, 0:HK], preferred_element_type=f32)
             + bqkv_ref[:, 0:HK])                                   # [S, HK]
    k_all = (jnp.dot(xk, wqkv_ref[:, HK:2 * HK], preferred_element_type=f32)
             + bqkv_ref[:, HK:2 * HK])                              # [S, HK]
    v_all = (jnp.dot(xv, wqkv_ref[:, 2 * HK:3 * HK], preferred_element_type=f32)
             + bqkv_ref[:, 2 * HK:3 * HK])                          # [S, HK]

    # Single slab transpose of K (not one per head): per-head scores become a
    # plain [S,dk]@[dk,S] matmul with no in-loop relayout.
    kT = k_all.T                                                    # [HK, S]

    scale = 1.0 / np.sqrt(d_k)
    attn_parts = []
    ctx_parts = []
    for h in range(n_heads):
        qh = q_all[:, h * d_k:(h + 1) * d_k].astype(bf16)           # [S, dk]
        kTh = kT[h * d_k:(h + 1) * d_k, :].astype(bf16)             # [dk, S]
        vh = v_all[:, h * d_v:(h + 1) * d_v].astype(bf16)           # [S, dv]

        s = jnp.dot(qh, kTh, preferred_element_type=f32) * scale + bias   # [S, S]
        m = jnp.max(s, axis=-1, keepdims=True)
        p = jnp.exp(s - m)
        denom = jnp.sum(p, axis=-1, keepdims=True)
        p = p * pl.reciprocal(denom, approx=True)                   # EUP slot
        attn_parts.append(p)
        ctx_parts.append(jnp.dot(p.astype(bf16), vh, preferred_element_type=f32))

    # Lane-packed attention probabilities [S, H*S] (bf16); wrapper unpacks.
    attn_ref[0] = jnp.concatenate(attn_parts, axis=-1).astype(bf16)

    # Output projection: lane-concat heads -> single [S,HK]@[HK,D] matmul.
    ctx = jnp.concatenate(ctx_parts, axis=-1).astype(bf16)          # [S, HK]
    output = jnp.dot(ctx, wo_ref[...], preferred_element_type=f32) + bo_ref[...]

    # residual + LayerNorm(d_model) with default affine (gamma=1, beta=0)
    y = output + xq
    mu = jnp.mean(y, axis=-1, keepdims=True)
    var = jnp.mean((y - mu) ** 2, axis=-1, keepdims=True)
    out_ref[0] = (y - mu) * jax.lax.rsqrt(var + LN_EPS)


# --------------------------- pallas_call wrapper -------------------------------
def _const_spec(shape):
    n = len(shape)
    return pl.BlockSpec(shape, lambda b, _n=n: (0,) * _n)


def multi_head_attention(Q, K, V, attn_mask, p):
    """Q, K, V: f32 [B, S, D]; attn_mask: bool [B, S, S] (True == masked)."""
    B, S, D = Q.shape
    # Precompute the additive attention bias (tiny: [B,S,S]).
    bias = jnp.where(attn_mask, NEG_INF, 0.0).astype(jnp.float32)
    # K / V only feed bf16 MXU matmuls -> ship them to the kernel in bf16.
    Kb = K.astype(jnp.bfloat16)
    Vb = V.astype(jnp.bfloat16)

    grid_spec = pltpu.PrefetchScalarGridSpec(
        num_scalar_prefetch=0,
        grid=(B,),
        in_specs=[
            pl.BlockSpec((1, S, D), lambda b: (b, 0, 0)),           # Q (f32, residual)
            pl.BlockSpec((1, S, D), lambda b: (b, 0, 0)),           # K (bf16)
            pl.BlockSpec((1, S, D), lambda b: (b, 0, 0)),           # V (bf16)
            _const_spec((D, 3 * HK)),                               # W_qkv packed (bf16)
            _const_spec((1, 3 * HK)),                               # b_qkv packed (f32)
            _const_spec((HK, D)),                                   # Wo (bf16)
            _const_spec((1, D)),                                    # bo (f32)
            pl.BlockSpec((1, S, S), lambda b: (b, 0, 0)),           # additive bias
        ],
        out_specs=[
            pl.BlockSpec((1, S, D), lambda b: (b, 0, 0)),
            pl.BlockSpec((1, S, n_heads * S), lambda b: (b, 0, 0)),
        ],
    )
    out, attn_packed = pl.pallas_call(
        mha_kernel,
        out_shape=(
            jax.ShapeDtypeStruct((B, S, D), jnp.float32),
            jax.ShapeDtypeStruct((B, S, n_heads * S), jnp.bfloat16),
        ),
        grid_spec=grid_spec,
        compiler_params=pltpu.CompilerParams(
            dimension_semantics=("parallel",)),     # 2-TC split on v7x
    )(Q, Kb, Vb, p["wqkv"], p["bqkv"], p["wo"], p["bo"], bias)

    # Unpack lane-packed probabilities [B, S, H*S] -> [B, H, S, S] outside the
    # kernel (cheap XLA reshape/transpose; the in-kernel store stays lane-dense).
    attn = attn_packed.reshape(B, S, n_heads, S).transpose(0, 2, 1, 3).astype(jnp.float32)
    return out, attn


# ------------------------------ parameters ------------------------------------
def init_params(key):
    def linear(kk, fan_in, shape):
        bound = 1.0 / np.sqrt(fan_in)
        return jax.random.uniform(kk, shape, jnp.float32, -bound, bound)

    ks = jax.random.split(key, 8)
    wq = linear(ks[0], d_model, (d_model, HK))
    bq = linear(ks[1], d_model, (HK,))
    wk = linear(ks[2], d_model, (d_model, HK))
    bk = linear(ks[3], d_model, (HK,))
    wv = linear(ks[4], d_model, (d_model, HK))
    bv = linear(ks[5], d_model, (HK,))
    # fresh nn.Linear(n_heads*d_v, d_model) in the PyTorch forward -> fixed
    # deterministic init here; rows of wo are indexed by h*d_v + d.
    wo = linear(ks[6], HK, (HK, d_model))
    bo = linear(ks[7], HK, (1, d_model))

    return {
        # packed / MXU-dtype versions consumed by the kernel
        "wqkv": jnp.concatenate([wq, wk, wv], axis=1).astype(jnp.bfloat16),  # [D, 3*HK]
        "bqkv": jnp.concatenate([bq, bk, bv]).reshape(1, 3 * HK),            # [1, 3*HK] f32
        "wo": wo.astype(jnp.bfloat16),                                       # [HK, D]
        "bo": bo,                                                            # [1, D] f32
        # full-precision copies for the pure-JAX reference
        "wq_f32": wq, "wk_f32": wk, "wv_f32": wv,
        "bq_f32": bq, "bk_f32": bk, "bv_f32": bv, "wo_f32": wo,
    }


# --------------------------- pure-JAX reference --------------------------------
def mha_reference(Q, K, V, attn_mask, p):
    B, S, _ = Q.shape

    def proj(x, w, b):                         # [B,S,D] -> [B,H,S,dh]
        y = x @ w + b
        return y.reshape(B, S, n_heads, d_k).transpose(0, 2, 1, 3)

    q = proj(Q, p["wq_f32"], p["bq_f32"])
    k = proj(K, p["wk_f32"], p["bk_f32"])
    v = proj(V, p["wv_f32"], p["bv_f32"])
    scores = jnp.einsum("bhqd,bhkd->bhqk", q, k) / np.sqrt(d_k)
    scores = scores + jnp.where(attn_mask, NEG_INF, 0.0)[:, None]
    attn = jax.nn.softmax(scores, axis=-1)
    ctx = jnp.einsum("bhqk,bhkd->bhqd", attn, v)
    ctx = ctx.transpose(0, 2, 1, 3).reshape(B, S, HK)
    out = ctx @ p["wo_f32"] + p["bo"]
    y = out + Q
    mu = jnp.mean(y, axis=-1, keepdims=True)
    var = jnp.mean((y - mu) ** 2, axis=-1, keepdims=True)
    return (y - mu) * jax.lax.rsqrt(var + LN_EPS), attn


# ---------------------------------- main ---------------------------------------
if __name__ == "__main__":
    key = jax.random.PRNGKey(0)
    kp, kq, kk, kv = jax.random.split(key, 4)
    params = init_params(kp)

    Q = jax.random.normal(kq, (BATCH, SEQ, d_model), jnp.float32)
    K = jax.random.normal(kk, (BATCH, SEQ, d_model), jnp.float32)
    V = jax.random.normal(kv, (BATCH, SEQ, d_model), jnp.float32)

    # padding-style mask: the last 3 key positions are masked for every query
    key_is_pad = jnp.zeros((BATCH, SEQ), dtype=bool).at[:, -3:].set(True)
    attn_mask = jnp.broadcast_to(key_is_pad[:, None, :], (BATCH, SEQ, SEQ))

    out, attn = multi_head_attention(Q, K, V, attn_mask, params)
    jax.block_until_ready((out, attn))

    assert out.shape == (BATCH, SEQ, d_model)
    assert attn.shape == (BATCH, n_heads, SEQ, SEQ)

    # Loose-tolerance sanity check vs a pure-JAX reference (the kernel uses
    # bf16 MXU inputs/weights and an approximate reciprocal in the softmax).
    ref_out, ref_attn = mha_reference(Q, K, V, attn_mask, params)
    np.testing.assert_allclose(np.asarray(out), np.asarray(ref_out),
                               rtol=1e-1, atol=1e-1)
    np.testing.assert_allclose(np.asarray(attn), np.asarray(ref_attn),
                               rtol=1e-1, atol=5e-2)

    print("KERNEL_OK")
</pallas_src>

<mosaic_0001>
module attributes {stable_mosaic.version = 11 : i64} {
  func.func @mha_kernel(%arg0: i32, %arg1: memref<1x16x128xf32, #tpu.memory_space<vmem>>, %arg2: memref<1x16x128xbf16, #tpu.memory_space<vmem>>, %arg3: memref<1x16x128xbf16, #tpu.memory_space<vmem>>, %arg4: memref<128x384xbf16, #tpu.memory_space<vmem>>, %arg5: memref<1x384xf32, #tpu.memory_space<vmem>>, %arg6: memref<128x128xbf16, #tpu.memory_space<vmem>>, %arg7: memref<1x128xf32, #tpu.memory_space<vmem>>, %arg8: memref<1x16x16xf32, #tpu.memory_space<vmem>>, %arg9: memref<1x16x128xf32, #tpu.memory_space<vmem>>, %arg10: memref<1x16x64xbf16, #tpu.memory_space<vmem>>) attributes {dimension_semantics = [#tpu.dimension_semantics<parallel>], iteration_bounds = array<i64: 2>, scalar_prefetch = 0 : i64, scratch_operands = 0 : i64, tpu.core_type = #tpu.core_type<tc>, window_params = [{transform_indices = @transform_0, window_bounds = array<i64: 1, 16, 128>}, {transform_indices = @transform_1, window_bounds = array<i64: 1, 16, 128>}, {transform_indices = @transform_2, window_bounds = array<i64: 1, 16, 128>}, {pipeline_mode = #tpu.pipeline_mode<synchronous>, transform_indices = @transform_3, window_bounds = array<i64: 128, 384>}, {pipeline_mode = #tpu.pipeline_mode<synchronous>, transform_indices = @transform_4, window_bounds = array<i64: 1, 384>}, {pipeline_mode = #tpu.pipeline_mode<synchronous>, transform_indices = @transform_5, window_bounds = array<i64: 128, 128>}, {pipeline_mode = #tpu.pipeline_mode<synchronous>, transform_indices = @transform_6, window_bounds = array<i64: 1, 128>}, {transform_indices = @transform_7, window_bounds = array<i64: 1, 16, 16>}, {transform_indices = @transform_8, window_bounds = array<i64: 1, 16, 128>}, {transform_indices = @transform_9, window_bounds = array<i64: 1, 16, 64>}]} {
    %c0 = arith.constant 0 : index
    %c0_0 = arith.constant 0 : index
    %c0_1 = arith.constant 0 : index
    %0 = vector.load %arg1[%c0, %c0_0, %c0_1] : memref<1x16x128xf32, #tpu.memory_space<vmem>>, vector<1x16x128xf32>
    %1 = vector.shape_cast %0 : vector<1x16x128xf32> to vector<16x128xf32>
    %c0_2 = arith.constant 0 : index
    %c0_3 = arith.constant 0 : index
    %c0_4 = arith.constant 0 : index
    %2 = vector.load %arg2[%c0_2, %c0_3, %c0_4] : memref<1x16x128xbf16, #tpu.memory_space<vmem>>, vector<1x16x128xbf16>
    %3 = vector.shape_cast %2 : vector<1x16x128xbf16> to vector<16x128xbf16>
    %c0_5 = arith.constant 0 : index
    %c0_6 = arith.constant 0 : index
    %c0_7 = arith.constant 0 : index
    %4 = vector.load %arg3[%c0_5, %c0_6, %c0_7] : memref<1x16x128xbf16, #tpu.memory_space<vmem>>, vector<1x16x128xbf16>
    %5 = vector.shape_cast %4 : vector<1x16x128xbf16> to vector<16x128xbf16>
    %c0_8 = arith.constant 0 : index
    %c0_9 = arith.constant 0 : index
    %c0_10 = arith.constant 0 : index
    %6 = vector.load %arg8[%c0_8, %c0_9, %c0_10] : memref<1x16x16xf32, #tpu.memory_space<vmem>>, vector<1x16x16xf32>
    %7 = vector.shape_cast %6 : vector<1x16x16xf32> to vector<16x16xf32>
    %8 = arith.truncf %1 : vector<16x128xf32> to vector<16x128xbf16>
    %c0_11 = arith.constant 0 : index
    %c0_12 = arith.constant 0 : index
    %9 = vector.load %arg4[%c0_11, %c0_12] : memref<128x384xbf16, #tpu.memory_space<vmem>>, vector<128x128xbf16>
    %cst = arith.constant dense<0.000000e+00> : vector<16x128xf32>
    %10 = tpu.matmul %8, %9, %cst {dimension_numbers = #tpu.dot_dimension_numbers<[1], [0], [0], [1], [0, 0, 1, 1], [], []>} : vector<16x128xbf16>, vector<128x128xbf16>, vector<16x128xf32> -> vector<16x128xf32>
    %c0_13 = arith.constant 0 : index
    %c0_14 = arith.constant 0 : index
    %11 = vector.load %arg5[%c0_13, %c0_14] : memref<1x384xf32, #tpu.memory_space<vmem>>, vector<1x128xf32>
    %12 = vector.broadcast %11 : vector<1x128xf32> to vector<16x128xf32>
    %13 = arith.addf %10, %12 : vector<16x128xf32>
    %c0_15 = arith.constant 0 : index
    %c128 = arith.constant 128 : index
    %14 = vector.load %arg4[%c0_15, %c128] : memref<128x384xbf16, #tpu.memory_space<vmem>>, vector<128x128xbf16>
    %cst_16 = arith.constant dense<0.000000e+00> : vector<16x128xf32>
    %15 = tpu.matmul %3, %14, %cst_16 {dimension_numbers = #tpu.dot_dimension_numbers<[1], [0], [0], [1], [0, 0, 1, 1], [], []>} : vector<16x128xbf16>, vector<128x128xbf16>, vector<16x128xf32> -> vector<16x128xf32>
    %c0_17 = arith.constant 0 : index
    %c128_18 = arith.constant 128 : index
    %16 = vector.load %arg5[%c0_17, %c128_18] : memref<1x384xf32, #tpu.memory_space<vmem>>, vector<1x128xf32>
    %17 = vector.broadcast %16 : vector<1x128xf32> to vector<16x128xf32>
    %18 = arith.addf %15, %17 : vector<16x128xf32>
    %c0_19 = arith.constant 0 : index
    %c256 = arith.constant 256 : index
    %19 = vector.load %arg4[%c0_19, %c256] : memref<128x384xbf16, #tpu.memory_space<vmem>>, vector<128x128xbf16>
    %cst_20 = arith.constant dense<0.000000e+00> : vector<16x128xf32>
    %20 = tpu.matmul %5, %19, %cst_20 {dimension_numbers = #tpu.dot_dimension_numbers<[1], [0], [0], [1], [0, 0, 1, 1], [], []>} : vector<16x128xbf16>, vector<128x128xbf16>, vector<16x128xf32> -> vector<16x128xf32>
    %c0_21 = arith.constant 0 : index
    %c256_22 = arith.constant 256 : index
    %21 = vector.load %arg5[%c0_21, %c256_22] : memref<1x384xf32, #tpu.memory_space<vmem>>, vector<1x128xf32>
    %22 = vector.broadcast %21 : vector<1x128xf32> to vector<16x128xf32>
    %23 = arith.addf %20, %22 : vector<16x128xf32>
    %24 = tpu.transpose %18, [1, 0] : vector<16x128xf32> -> vector<128x16xf32>
    %25 = vector.extract_strided_slice %13 {offsets = [0, 0], sizes = [16, 32], strides = [1, 1]} : vector<16x128xf32> to vector<16x32xf32>
    %26 = arith.truncf %25 : vector<16x32xf32> to vector<16x32xbf16>
    %27 = vector.extract_strided_slice %24 {offsets = [0, 0], sizes = [32, 16], strides = [1, 1]} : vector<128x16xf32> to vector<32x16xf32>
    %28 = arith.truncf %27 : vector<32x16xf32> to vector<32x16xbf16>
    %29 = vector.extract_strided_slice %23 {offsets = [0, 0], sizes = [16, 32], strides = [1, 1]} : vector<16x128xf32> to vector<16x32xf32>
    %30 = arith.truncf %29 : vector<16x32xf32> to vector<16x32xbf16>
    %cst_23 = arith.constant dense<0.000000e+00> : vector<16x16xf32>
    %31 = tpu.matmul %26, %28, %cst_23 {dimension_numbers = #tpu.dot_dimension_numbers<[1], [0], [0], [1], [0, 0, 1, 1], [], []>} : vector<16x32xbf16>, vector<32x16xbf16>, vector<16x16xf32> -> vector<16x16xf32>
    %cst_24 = arith.constant 0.176776692 : f32
    %32 = vector.broadcast %cst_24 : f32 to vector<16x16xf32>
    %33 = arith.mulf %31, %32 : vector<16x16xf32>
    %34 = arith.addf %33, %7 : vector<16x16xf32>
    %cst_25 = arith.constant dense<0xFF800000> : vector<16xf32>
    %35 = vector.multi_reduction <maximumf>, %34, %cst_25 [1] : vector<16x16xf32> to vector<16xf32>
    %36 = vector.shape_cast %35 : vector<16xf32> to vector<16x1xf32>
    %37 = vector.broadcast %36 : vector<16x1xf32> to vector<16x16xf32>
    %38 = arith.subf %34, %37 : vector<16x16xf32>
    %39 = math.exp %38 : vector<16x16xf32>
    %cst_26 = arith.constant dense<0.000000e+00> : vector<16xf32>
    %40 = vector.multi_reduction <add>, %39, %cst_26 [1] : vector<16x16xf32> to vector<16xf32>
    %41 = vector.shape_cast %40 : vector<16xf32> to vector<16x1xf32>
    %42 = tpu.reciprocal %41 {approx = true} : vector<16x1xf32> -> vector<16x1xf32>
    %43 = vector.broadcast %42 : vector<16x1xf32> to vector<16x16xf32>
    %44 = arith.mulf %39, %43 : vector<16x16xf32>
    %45 = arith.truncf %44 : vector<16x16xf32> to vector<16x16xbf16>
    %cst_27 = arith.constant dense<0.000000e+00> : vector<16x32xf32>
    %46 = tpu.matmul %45, %30, %cst_27 {dimension_numbers = #tpu.dot_dimension_numbers<[1], [0], [0], [1], [0, 0, 1, 1], [], []>} : vector<16x16xbf16>, vector<16x32xbf16>, vector<16x32xf32> -> vector<16x32xf32>
    %47 = vector.extract_strided_slice %13 {offsets = [0, 32], sizes = [16, 32], strides = [1, 1]} : vector<16x128xf32> to vector<16x32xf32>
    %48 = arith.truncf %47 : vector<16x32xf32> to vector<16x32xbf16>
    %49 = vector.extract_strided_slice %24 {offsets = [32, 0], sizes = [32, 16], strides = [1, 1]} : vector<128x16xf32> to vector<32x16xf32>
    %50 = arith.truncf %49 : vector<32x16xf32> to vector<32x16xbf16>
    %51 = vector.extract_strided_slice %23 {offsets = [0, 32], sizes = [16, 32], strides = [1, 1]} : vector<16x128xf32> to vector<16x32xf32>
    %52 = arith.truncf %51 : vector<16x32xf32> to vector<16x32xbf16>
    %cst_28 = arith.constant dense<0.000000e+00> : vector<16x16xf32>
    %53 = tpu.matmul %48, %50, %cst_28 {dimension_numbers = #tpu.dot_dimension_numbers<[1], [0], [0], [1], [0, 0, 1, 1], [], []>} : vector<16x32xbf16>, vector<32x16xbf16>, vector<16x16xf32> -> vector<16x16xf32>
    %cst_29 = arith.constant 0.176776692 : f32
    %54 = vector.broadcast %cst_29 : f32 to vector<16x16xf32>
    %55 = arith.mulf %53, %54 : vector<16x16xf32>
    %56 = arith.addf %55, %7 : vector<16x16xf32>
    %cst_30 = arith.constant dense<0xFF800000> : vector<16xf32>
    %57 = vector.multi_reduction <maximumf>, %56, %cst_30 [1] : vector<16x16xf32> to vector<16xf32>
    %58 = vector.shape_cast %57 : vector<16xf32> to vector<16x1xf32>
    %59 = vector.broadcast %58 : vector<16x1xf32> to vector<16x16xf32>
    %60 = arith.subf %56, %59 : vector<16x16xf32>
    %61 = math.exp %60 : vector<16x16xf32>
    %cst_31 = arith.constant dense<0.000000e+00> : vector<16xf32>
    %62 = vector.multi_reduction <add>, %61, %cst_31 [1] : vector<16x16xf32> to vector<16xf32>
    %63 = vector.shape_cast %62 : vector<16xf32> to vector<16x1xf32>
    %64 = tpu.reciprocal %63 {approx = true} : vector<16x1xf32> -> vector<16x1xf32>
    %65 = vector.broadcast %64 : vector<16x1xf32> to vector<16x16xf32>
    %66 = arith.mulf %61, %65 : vector<16x16xf32>
    %67 = arith.truncf %66 : vector<16x16xf32> to vector<16x16xbf16>
    %cst_32 = arith.constant dense<0.000000e+00> : vector<16x32xf32>
    %68 = tpu.matmul %67, %52, %cst_32 {dimension_numbers = #tpu.dot_dimension_numbers<[1], [0], [0], [1], [0, 0, 1, 1], [], []>} : vector<16x16xbf16>, vector<16x32xbf16>, vector<16x32xf32> -> vector<16x32xf32>
    %69 = vector.extract_strided_slice %13 {offsets = [0, 64], sizes = [16, 32], strides = [1, 1]} : vector<16x128xf32> to vector<16x32xf32>
    %70 = arith.truncf %69 : vector<16x32xf32> to vector<16x32xbf16>
    %71 = vector.extract_strided_slice %24 {offsets = [64, 0], sizes = [32, 16], strides = [1, 1]} : vector<128x16xf32> to vector<32x16xf32>
    %72 = arith.truncf %71 : vector<32x16xf32> to vector<32x16xbf16>
    %73 = vector.extract_strided_slice %23 {offsets = [0, 64], sizes = [16, 32], strides = [1, 1]} : vector<16x128xf32> to vector<16x32xf32>
    %74 = arith.truncf %73 : vector<16x32xf32> to vector<16x32xbf16>
    %cst_33 = arith.constant dense<0.000000e+00> : vector<16x16xf32>
    %75 = tpu.matmul %70, %72, %cst_33 {dimension_numbers = #tpu.dot_dimension_numbers<[1], [0], [0], [1], [0, 0, 1, 1], [], []>} : vector<16x32xbf16>, vector<32x16xbf16>, vector<16x16xf32> -> vector<16x16xf32>
    %cst_34 = arith.constant 0.176776692 : f32
    %76 = vector.broadcast %cst_34 : f32 to vector<16x16xf32>
    %77 = arith.mulf %75, %76 : vector<16x16xf32>
    %78 = arith.addf %77, %7 : vector<16x16xf32>
    %cst_35 = arith.constant dense<0xFF800000> : vector<16xf32>
    %79 = vector.multi_reduction <maximumf>, %78, %cst_35 [1] : vector<16x16xf32> to vector<16xf32>
    %80 = vector.shape_cast %79 : vector<16xf32> to vector<16x1xf32>
    %81 = vector.broadcast %80 : vector<16x1xf32> to vector<16x16xf32>
    %82 = arith.subf %78, %81 : vector<16x16xf32>
    %83 = math.exp %82 : vector<16x16xf32>
    %cst_36 = arith.constant dense<0.000000e+00> : vector<16xf32>
    %84 = vector.multi_reduction <add>, %83, %cst_36 [1] : vector<16x16xf32> to vector<16xf32>
    %85 = vector.shape_cast %84 : vector<16xf32> to vector<16x1xf32>
    %86 = tpu.reciprocal %85 {approx = true} : vector<16x1xf32> -> vector<16x1xf32>
    %87 = vector.broadcast %86 : vector<16x1xf32> to vector<16x16xf32>
    %88 = arith.mulf %83, %87 : vector<16x16xf32>
    %89 = arith.truncf %88 : vector<16x16xf32> to vector<16x16xbf16>
    %cst_37 = arith.constant dense<0.000000e+00> : vector<16x32xf32>
    %90 = tpu.matmul %89, %74, %cst_37 {dimension_numbers = #tpu.dot_dimension_numbers<[1], [0], [0], [1], [0, 0, 1, 1], [], []>} : vector<16x16xbf16>, vector<16x32xbf16>, vector<16x32xf32> -> vector<16x32xf32>
    %91 = vector.extract_strided_slice %13 {offsets = [0, 96], sizes = [16, 32], strides = [1, 1]} : vector<16x128xf32> to vector<16x32xf32>
    %92 = arith.truncf %91 : vector<16x32xf32> to vector<16x32xbf16>
    %93 = vector.extract_strided_slice %24 {offsets = [96, 0], sizes = [32, 16], strides = [1, 1]} : vector<128x16xf32> to vector<32x16xf32>
    %94 = arith.truncf %93 : vector<32x16xf32> to vector<32x16xbf16>
    %95 = vector.extract_strided_slice %23 {offsets = [0, 96], sizes = [16, 32], strides = [1, 1]} : vector<16x128xf32> to vector<16x32xf32>
    %96 = arith.truncf %95 : vector<16x32xf32> to vector<16x32xbf16>
    %cst_38 = arith.constant dense<0.000000e+00> : vector<16x16xf32>
    %97 = tpu.matmul %92, %94, %cst_38 {dimension_numbers = #tpu.dot_dimension_numbers<[1], [0], [0], [1], [0, 0, 1, 1], [], []>} : vector<16x32xbf16>, vector<32x16xbf16>, vector<16x16xf32> -> vector<16x16xf32>
    %cst_39 = arith.constant 0.176776692 : f32
    %98 = vector.broadcast %cst_39 : f32 to vector<16x16xf32>
    %99 = arith.mulf %97, %98 : vector<16x16xf32>
    %100 = arith.addf %99, %7 : vector<16x16xf32>
    %cst_40 = arith.constant dense<0xFF800000> : vector<16xf32>
    %101 = vector.multi_reduction <maximumf>, %100, %cst_40 [1] : vector<16x16xf32> to vector<16xf32>
    %102 = vector.shape_cast %101 : vector<16xf32> to vector<16x1xf32>
    %103 = vector.broadcast %102 : vector<16x1xf32> to vector<16x16xf32>
    %104 = arith.subf %100, %103 : vector<16x16xf32>
    %105 = math.exp %104 : vector<16x16xf32>
    %cst_41 = arith.constant dense<0.000000e+00> : vector<16xf32>
    %106 = vector.multi_reduction <add>, %105, %cst_41 [1] : vector<16x16xf32> to vector<16xf32>
    %107 = vector.shape_cast %106 : vector<16xf32> to vector<16x1xf32>
    %108 = tpu.reciprocal %107 {approx = true} : vector<16x1xf32> -> vector<16x1xf32>
    %109 = vector.broadcast %108 : vector<16x1xf32> to vector<16x16xf32>
    %110 = arith.mulf %105, %109 : vector<16x16xf32>
    %111 = arith.truncf %110 : vector<16x16xf32> to vector<16x16xbf16>
    %cst_42 = arith.constant dense<0.000000e+00> : vector<16x32xf32>
    %112 = tpu.matmul %111, %96, %cst_42 {dimension_numbers = #tpu.dot_dimension_numbers<[1], [0], [0], [1], [0, 0, 1, 1], [], []>} : vector<16x16xbf16>, vector<16x32xbf16>, vector<16x32xf32> -> vector<16x32xf32>
    %113 = tpu.concatenate %44, %66, %88, %110 in 1 : vector<16x16xf32>, vector<16x16xf32>, vector<16x16xf32>, vector<16x16xf32> -> vector<16x64xf32>
    %114 = arith.truncf %113 : vector<16x64xf32> to vector<16x64xbf16>
    %c0_43 = arith.constant 0 : index
    %c0_44 = arith.constant 0 : index
    %c0_45 = arith.constant 0 : index
    %115 = vector.load %arg10[%c0_43, %c0_44, %c0_45] : memref<1x16x64xbf16, #tpu.memory_space<vmem>>, vector<1x16x64xbf16>
    %116 = vector.shape_cast %115 : vector<1x16x64xbf16> to vector<16x64xbf16>
    %117 = vector.shape_cast %114 : vector<16x64xbf16> to vector<1x16x64xbf16>
    tpu.vector_store %arg10[%c0_43, %c0_44, %c0_45], %117 {strides = array<i32>} : memref<1x16x64xbf16, #tpu.memory_space<vmem>>, vector<1x16x64xbf16>,
    %118 = tpu.concatenate %46, %68, %90, %112 in 1 : vector<16x32xf32>, vector<16x32xf32>, vector<16x32xf32>, vector<16x32xf32> -> vector<16x128xf32>
    %119 = arith.truncf %118 : vector<16x128xf32> to vector<16x128xbf16>
    %c0_46 = arith.constant 0 : index
    %c0_47 = arith.constant 0 : index
    %120 = vector.load %arg6[%c0_46, %c0_47] : memref<128x128xbf16, #tpu.memory_space<vmem>>, vector<128x128xbf16>
    %cst_48 = arith.constant dense<0.000000e+00> : vector<16x128xf32>
    %121 = tpu.matmul %119, %120, %cst_48 {dimension_numbers = #tpu.dot_dimension_numbers<[1], [0], [0], [1], [0, 0, 1, 1], [], []>} : vector<16x128xbf16>, vector<128x128xbf16>, vector<16x128xf32> -> vector<16x128xf32>
    %c0_49 = arith.constant 0 : index
    %c0_50 = arith.constant 0 : index
    %122 = vector.load %arg7[%c0_49, %c0_50] : memref<1x128xf32, #tpu.memory_space<vmem>>, vector<1x128xf32>
    %123 = vector.broadcast %122 : vector<1x128xf32> to vector<16x128xf32>
    %124 = arith.addf %121, %123 : vector<16x128xf32>
    %125 = arith.addf %124, %1 : vector<16x128xf32>
    %cst_51 = arith.constant dense<0.000000e+00> : vector<16xf32>
    %126 = vector.multi_reduction <add>, %125, %cst_51 [1] : vector<16x128xf32> to vector<16xf32>
    %127 = vector.shape_cast %126 : vector<16xf32> to vector<16x1xf32>
    %cst_52 = arith.constant 1.280000e+02 : f32
    %128 = vector.broadcast %cst_52 : f32 to vector<16x1xf32>
    %129 = arith.divf %127, %128 : vector<16x1xf32>
    %130 = vector.broadcast %129 : vector<16x1xf32> to vector<16x128xf32>
    %131 = arith.subf %125, %130 : vector<16x128xf32>
    %132 = arith.mulf %131, %131 : vector<16x128xf32>
    %cst_53 = arith.constant dense<0.000000e+00> : vector<16xf32>
    %133 = vector.multi_reduction <add>, %132, %cst_53 [1] : vector<16x128xf32> to vector<16xf32>
    %134 = vector.shape_cast %133 : vector<16xf32> to vector<16x1xf32>
    %cst_54 = arith.constant 1.280000e+02 : f32
    %135 = vector.broadcast %cst_54 : f32 to vector<16x1xf32>
    %136 = arith.divf %134, %135 : vector<16x1xf32>
    %137 = vector.broadcast %129 : vector<16x1xf32> to vector<16x128xf32>
    %138 = arith.subf %125, %137 : vector<16x128xf32>
    %cst_55 = arith.constant 9.99999974E-6 : f32
    %139 = vector.broadcast %cst_55 : f32 to vector<16x1xf32>
    %140 = arith.addf %136, %139 : vector<16x1xf32>
    %141 = math.rsqrt %140 : vector<16x1xf32>
    %142 = vector.broadcast %141 : vector<16x1xf32> to vector<16x128xf32>
    %143 = arith.mulf %138, %142 : vector<16x128xf32>
    %c0_56 = arith.constant 0 : index
    %c0_57 = arith.constant 0 : index
    %c0_58 = arith.constant 0 : index
    %144 = vector.load %arg9[%c0_56, %c0_57, %c0_58] : memref<1x16x128xf32, #tpu.memory_space<vmem>>, vector<1x16x128xf32>
    %145 = vector.shape_cast %144 : vector<1x16x128xf32> to vector<16x128xf32>
    %146 = vector.shape_cast %143 : vector<16x128xf32> to vector<1x16x128xf32>
    tpu.vector_store %arg9[%c0_56, %c0_57, %c0_58], %146 {strides = array<i32>} : memref<1x16x128xf32, #tpu.memory_space<vmem>>, vector<1x16x128xf32>,
    return
  }
  func.func @transform_0(%arg0: i32) -> (i32, i32, i32) {
    %c0_i32 = arith.constant 0 : i32
    %c0_i32_0 = arith.constant 0 : i32
    %c0_i32_1 = arith.constant 0 : i32
    return %arg0, %c0_i32, %c0_i32_0 : i32, i32, i32
  }
  func.func @transform_1(%arg0: i32) -> (i32, i32, i32) {
    %c0_i32 = arith.constant 0 : i32
    %c0_i32_0 = arith.constant 0 : i32
    %c0_i32_1 = arith.constant 0 : i32
    return %arg0, %c0_i32, %c0_i32_0 : i32, i32, i32
  }
  func.func @transform_2(%arg0: i32) -> (i32, i32, i32) {
    %c0_i32 = arith.constant 0 : i32
    %c0_i32_0 = arith.constant 0 : i32
    %c0_i32_1 = arith.constant 0 : i32
    return %arg0, %c0_i32, %c0_i32_0 : i32, i32, i32
  }
  func.func @transform_3(%arg0: i32) -> (i32, i32) {
    %c0_i32 = arith.constant 0 : i32
    %c0_i32_0 = arith.constant 0 : i32
    %c0_i32_1 = arith.constant 0 : i32
    return %c0_i32, %c0_i32_0 : i32, i32
  }
  func.func @transform_4(%arg0: i32) -> (i32, i32) {
    %c0_i32 = arith.constant 0 : i32
    %c0_i32_0 = arith.constant 0 : i32
    %c0_i32_1 = arith.constant 0 : i32
    return %c0_i32, %c0_i32_0 : i32, i32
  }
  func.func @transform_5(%arg0: i32) -> (i32, i32) {
    %c0_i32 = arith.constant 0 : i32
    %c0_i32_0 = arith.constant 0 : i32
    %c0_i32_1 = arith.constant 0 : i32
    return %c0_i32, %c0_i32_0 : i32, i32
  }
  func.func @transform_6(%arg0: i32) -> (i32, i32) {
    %c0_i32 = arith.constant 0 : i32
    %c0_i32_0 = arith.constant 0 : i32
    %c0_i32_1 = arith.constant 0 : i32
    return %c0_i32, %c0_i32_0 : i32, i32
  }
  func.func @transform_7(%arg0: i32) -> (i32, i32, i32) {
    %c0_i32 = arith.constant 0 : i32
    %c0_i32_0 = arith.constant 0 : i32
    %c0_i32_1 = arith.constant 0 : i32
    return %arg0, %c0_i32, %c0_i32_0 : i32, i32, i32
  }
  func.func @transform_8(%arg0: i32) -> (i32, i32, i32) {
    %c0_i32 = arith.constant 0 : i32
    %c0_i32_0 = arith.constant 0 : i32
    %c0_i32_1 = arith.constant 0 : i32
    return %arg0, %c0_i32, %c0_i32_0 : i32, i32, i32
  }
  func.func @transform_9(%arg0: i32) -> (i32, i32, i32) {
    %c0_i32 = arith.constant 0 : i32
    %c0_i32_0 = arith.constant 0 : i32
    %c0_i32_1 = arith.constant 0 : i32
    return %arg0, %c0_i32, %c0_i32_0 : i32, i32, i32
  }
}

</mosaic_0001>

<bundles_post_ra>
// kernel: tpu_custom_call.1
= control target key start
LH: loop header
LB: loop body
LE: loop exit
PB: predicated region body
PF: predicated region fallthrough
CT: control target
= control target key end

     0   :  { %s3299_s0 = inlined_call_operand.hbm [shape: f32[2,16,128], index: 0, kind: input, shape index: {}]   ;;  %s3300_s1 = inlined_call_operand.hbm [shape: bf16[2,16,128], index: 1, kind: input, shape index: {}]   ;;  %s3301_s2 = inlined_call_operand.hbm [shape: bf16[2,16,128], index: 2, kind: input, shape index: {}]   ;;  %s3302_s3 = inlined_call_operand.hbm [shape: bf16[128,384], index: 3, kind: input, shape index: {}]   ;;  %s3303_s4 = inlined_call_operand.vmem [shape: f32[1,384], index: 4, kind: input, shape index: {}]   ;;  %s3304_s5 = inlined_call_operand.hbm [shape: bf16[128,128], index: 5, kind: input, shape index: {}]   ;;  %s3305_s6 = inlined_call_operand.vmem [shape: f32[1,128], index: 6, kind: input, shape index: {}]   ;;  %s3306_s7 = inlined_call_operand.hbm [shape: f32[2,16,16], index: 7, kind: input, shape index: {}]   ;;  %s3307_s8 = inlined_call_operand.hbm [shape: f32[2,16,128], index: 8, kind: output, shape index: {0}]   ;;  %s3308_s9 = inlined_call_operand.hbm [shape: bf16[2,16,64], index: 9, kind: output, shape index: {1}]  }
   0x1   :  { %3328 = sst [smem:[#allocation28_spill]] %s3300_s1 }
   0x2   :  { %3329 = sst [smem:[#allocation29_spill]] %s3302_s3 }
   0x3   :  { %3330 = sst [smem:[#allocation30_spill]] %s3307_s8 }
   0x4   :  { %3331 = sst [smem:[#allocation31_spill]] %s3308_s9 }
   0x5   :  { %15 = vsyncpa [#allocation3], 0 }
   0x6   :  { %17 = vsyncpa [#allocation3 + $0x1], 0 }
   0x7   :  { %18 = vsyncpa [#allocation6], 0 }
   0x8   :  { %20 = vsyncpa [#allocation6 + $0x1], 0 }
   0x9   :  { %21 = vsyncpa [#allocation9], 0 }
   0xa   :  { %22 = vsyncpa [#allocation12], 0 }
   0xb   :  { %24 = vsyncpa [#allocation12 + $0x1], 0 }
   0xc   :  { %25 = vsyncpa [#allocation4], 0 }
   0xd   :  { %27 = vsyncpa [#allocation4 + $0x1], 0 }
   0xe   :  { %28 = vsyncpa [#allocation15], 0 }
   0xf   :  { %30 = vsyncpa [#allocation15 + $0x1], 0  ;;  %s2657_s30 = smov 0   ;;  %s2659_s10 = smov 0  }
  0x10   :  { %s2661_s11 = smov 0   ;;  %s2663_s12 = smov 0  }
  0x11 LB: > { %3332 = sst [smem:[#allocation22_spill]] %s2569_s30  ;;  %s2678_s13 = sadd.s32 4294967295, %s2581_s12   ;;  %s2581_s12 = sphi %s2663_s12, %s3365_s12   ;;  %s2577_s11 = sphi %s2661_s11, %s3367_s11   ;;  %s2573_s10 = sphi %s2659_s10, %s3369_s10   ;;  %s2569_s30 = sphi %s2657_s30, %s3368_s30  }
  0x12   : > { %3333 = sst [smem:[#allocation23_spill]] %s2577_s11  ;;  %s1826_s14 = sadd.s32 4294967294, %s2581_s12  }
  0x13   : > { %s2682_s15 = sadd.s32 1, %s2581_s12   ;;  %s43_s16 = sadd.s32 1, %s2577_s11 }
  0x14   : > { %3334 = sst [smem:[#allocation24_spill]] %s2682_s15  ;;  %s40_s17 = ssub.s32 %s2581_s12, %s2682_s15 }
  0x15   : > { %p50_p0 = scmp.ne.s32.totalorder %s2577_s11, %s2573_s10  ;;  %p41_p1 = scmp.eq.s32.totalorder %s40_s17, 0 }
  0x16   : > { %p51_p2 = scmp.eq.s32.totalorder %s2581_s12, 0  ;;  %p56_p3 = scmp.ne.s32.totalorder %s2573_s10, %s2569_s30 }
  0x17   : > { %p3318_p4 = scmp.eq.s32.totalorder %s2678_s13, 0  ;;  %p242_p7 = scmp.eq.s32.totalorder %s2678_s13, 1 }
  0x18   : > { %s2694_s18 = scalar_select %p41_p1, %s2577_s11, %s43_s16  }
  0x19   : > { %p2696_p5 = por %p51_p2, %p50_p0  ;;  %p2702_p6 = por %p3318_p4, %p56_p3 }
  0x1a   : > { %3335 = sst [smem:[#allocation25_spill]] %s2694_s18  ;;  %p248_p8 = scmp.eq.s32.totalorder %s1826_s14, 1 }
  0x1b   : > { %s3337_s20 = scalar_select %p2702_p6, 1, 0 }
  0x1c   : > { %p1827_p9 = scmp.ge.s32.totalorder %s2581_s12, 1  ;;  %p281_p10 = scmp.lt.s32.totalorder %s2581_s12, 3 }
  0x1d   : > { %p2709_p11 = por %p242_p7, %p50_p0  ;;  %p2713_p12 = por %p248_p8, %p56_p3 }
  0x1e   : > { %p2717_p13 = pnand %p1827_p9, %p281_p10  ;;  %s2583_s24 = smov [#allocation8]  }
  0x1f   : > { %s3338_s21 = scalar_select %p2709_p11, 1, 0 }
  0x20   : > { %s3340_s22 = scalar_select %p2713_p12, 1, 0 }
  0x21   : > { %3339 = sst [smem:[#allocation26_spill]] %s3338_s21  ;;  %p2128_p1 = pneg %p2717_p13 }
  0x22   : > { %3341 = sst [smem:[#allocation27_spill]] %s3340_s22  ;;  %s293_s25 = sshll.u32 %s2583_s24, 4  ;;  %s294_s25 = int_to_ptr.vmem [resolvable:$true] %s293_s25 }
  0x23   : > { %s3342_s23 = scalar_select %p2717_p13, 1, 0 }
  0x24   : > { %p2725_p2 = pnand %p2128_p1, %p3318_p4  ;;  %p2157_p3 = scmp.lt.s32.totalorder %s2581_s12, 2 }
  0x25   : > { %s2322_s27 = scalar_lea.vmem %s294_s25, 3072  ;;  %p2330_p12 = scmp.lt.s32.totalorder %s294_s25, %s294_s25 }
  0x26   : > { %s3343_s26 = scalar_select %p2725_p2, 1, 0 }
  0x27   : > { %p3319_p7 = pneg %p2725_p2  ;;  %p2323_p8 = scmp.ne.s32.totalorder %s294_s25, %s2322_s27 }
  0x28   : > { %p2331_p11 = scmp.lt.s32.totalorder %s2322_s27, %s2322_s27 }
  0x29   : > { %p2325_p9 = pnand %p2323_p8, %p3319_p7 }
  0x2a   : > { %p2332_p6 = por %p2331_p11, %p2330_p12 }
  0x2b   : > { %p2326_p10 = pneg %p2325_p9 }
  0x2d   : > { %p2333_p13 = pnand %p2332_p6, %p2326_p10 }
  0x2f   : > { %2336 = shalt.err (!%p2333_p13)
}
  0x30   : > { %s2584_s28 = smov 192   ;;  %s2585_s29 = smov 12  }
  0x31   : > { %s3344_s3 = sld [smem:[#allocation29_spill]]  ;;  %s2742_s17 = sand.u32 1, %s2577_s11  }
  0x32   : > { %p2748_p6 = pnand %p2157_p3, %p2696_p5  ;;  %s347_s27 = sand.u32 1, %s2581_s12  }
  0x33   : > { %s3316_s18 = sshll.u32 %s2742_s17, 3  ;;  %s3317_s15 = sshll.u32 %s2581_s12, 7 }
  0x34   : > { %s3346_s1 = sld [smem:[#allocation28_spill]]  ;;  %s351_s19 = scalar_lea.vmem [#allocation5], %s3316_s18 }
  0x35   : > { %p2772_p11 = pneg %p2748_p6 }
  0x37   : > { %2131 = dma.hbm_to_vmem [thread:$0]  (!%p2725_p2), %s3344_s3, 3072, %s294_s25, [#allocation9], %s2584_s28, %s2584_s28, %s2585_s29  }
  0x38   : > { %s358_s25 = sshll.u32 %s351_s19, 4  ;;  %s2766_s28 = scalar_lea.sflag [#allocation6], %s347_s27  ;;  %s2764_s25 = int_to_ptr.vmem [resolvable:$true] %s358_s25 }
  0x3a   : > { %s2760_s14 = scalar_lea.hbm %s3346_s1, %s3317_s15  ;;  %s2342_s18 = scalar_lea.hbm %s3346_s1, 256 }
  0x3b   : > { %s2337_s29 = scalar_lea.hbm %s2760_s14, 128  ;;  %p2343_p1 = scmp.lt.s32.totalorder %s2760_s14, %s3346_s1 }
  0x3c   : > { %p2338_p5 = scmp.ne.s32.totalorder %s2760_s14, %s2337_s29  ;;  %p2344_p3 = scmp.lt.s32.totalorder %s2342_s18, %s2337_s29 }
  0x3e   : > { %p2340_p12 = pnand %p2772_p11, %p2338_p5  ;;  %p2345_p8 = por %p2344_p3, %p2343_p1 }
  0x40   : > { %p2341_p13 = pneg %p2340_p12 }
  0x42   : > { %p2346_p9 = pnand %p2345_p8, %p2341_p13 }
  0x44   : > { %2349 = shalt.err (!%p2346_p9)
}
  0x45   : > { %s2350_s27 = scalar_lea.vmem %s2764_s25, 128  ;;  %s2586_s3 = smov [#allocation5]  }
  0x46   : > { %p2351_p10 = scmp.ne.s32.totalorder %s2764_s25, %s2350_s27  ;;  %s2355_s30 = sshll.u32 %s2586_s3, 4  ;;  %s2356_s30 = int_to_ptr.vmem [resolvable:$false] %s2355_s30 }
  0x47   : > { %s2357_s22 = scalar_lea.vmem %s2356_s30, 256  ;;  %p2358_p0 = scmp.lt.s32.totalorder %s2764_s25, %s2356_s30 }
  0x48   : > { %p2353_p5 = pnand %p2351_p10, %p2772_p11  ;;  %p2359_p4 = scmp.lt.s32.totalorder %s2357_s22, %s2350_s27 }
  0x4a   : > { %p2354_p12 = pneg %p2353_p5  ;;  %p2360_p7 = por %p2359_p4, %p2358_p0 }
  0x4c   : > { %p2361_p2 = pnand %p2360_p7, %p2354_p12 }
  0x4e   : > { %2364 = shalt.err (!%p2361_p2)
}
  0x4f   : > { %s2587_s15 = smov 64   ;;  %s2588_s18 = smov 4  }
  0x50   : > { %2141 = dma.hbm_to_vmem [thread:$0]  (!%p2748_p6), %s2760_s14, 128, %s2764_s25, %s2766_s28, %s2587_s15, %s2587_s15, %s2588_s18  }
  0x51   : > { %s3348_s3 = sshll.u32 %s2581_s12, 7  ;;  %s3349_s30 = sshll.u32 %s2742_s17, 3 }
  0x52   : > { %s2803_s27 = scalar_lea.hbm %s3301_s2, %s3348_s3  ;;  %s372_s22 = scalar_lea.vmem [#allocation7], %s3349_s30 }
  0x53   : > { %s379_s1 = sshll.u32 %s372_s22, 4  ;;  %s2589_s11 = smov [#allocation10]   ;;  %s2807_s1 = int_to_ptr.vmem [resolvable:$true] %s379_s1 }
  0x54   : > { %s309_s8 = sshll.u32 %s2589_s11, 4  ;;  %s3327_s9 = sshll.u32 %s2742_s17, 4  ;;  %s310_s8 = int_to_ptr.vmem [resolvable:$true] %s309_s8 }
  0x55   : > { %s2376_s21 = scalar_lea.vmem %s310_s8, 1024  ;;  %p3350_p2 = scmp.ne.s32.totalorder %s3343_s26, 0 }
  0x56   : > { %p2377_p4 = scmp.ne.s32.totalorder %s310_s8, %s2376_s21  ;;  %p2384_p1 = scmp.lt.s32.totalorder %s310_s8, %s310_s8 }
  0x57   : > { %p3351_p0 = pneg %p3350_p2  ;;  %p2385_p3 = scmp.lt.s32.totalorder %s2376_s21, %s2376_s21 }
  0x59   : > { %p2379_p7 = pnand %p2377_p4, %p3351_p0  ;;  %p2386_p8 = por %p2385_p3, %p2384_p1 }
  0x5b   : > { %p2380_p13 = pneg %p2379_p7 }
  0x5d   : > { %p2387_p9 = pnand %p2386_p8, %p2380_p13 }
  0x5f   : > { %2390 = shalt.err (!%p2387_p9)
}
  0x60   : > { %2134 = dma.hbm_to_vmem [thread:$0]  (!%p3350_p2), %s3304_s5, 1024, %s310_s8, [#allocation9], %s2587_s15, %s2587_s15, %s2588_s18  }
  0x61   : > { %s1908_s25 = sshll.u32 %s2581_s12, 8  ;;  %s330_s26 = scalar_lea.vmem [#allocation2], %s3327_s9 }
  0x62   : > { %s2827_s29 = scalar_lea.hbm %s3299_s0, %s1908_s25  ;;  %s337_s19 = sshll.u32 %s330_s26, 4  ;;  %s2831_s19 = int_to_ptr.vmem [resolvable:$true] %s337_s19 }
  0x63   : > { %s327_s30 = scalar_lea.sflag [#allocation3], %s2742_s17  ;;  %s2391_s22 = scalar_lea.hbm %s2827_s29, 256 }
  0x64   : > { %p2392_p10 = scmp.ne.s32.totalorder %s2827_s29, %s2391_s22  ;;  %s2396_s11 = scalar_lea.hbm %s3299_s0, 512 }
  0x65   : > { %p2397_p4 = scmp.lt.s32.totalorder %s2827_s29, %s3299_s0  ;;  %p2398_p2 = scmp.lt.s32.totalorder %s2396_s11, %s2391_s22 }
  0x66   : > { %p2394_p5 = pnand %p2392_p10, %p2772_p11 }
  0x67   : > { %p2399_p0 = por %p2398_p2, %p2397_p4 }
  0x68   : > { %p2395_p12 = pneg %p2394_p5 }
  0x6a   : > { %p2400_p7 = pnand %p2399_p0, %p2395_p12 }
  0x6c   : > { %2403 = shalt.err (!%p2400_p7)
}
  0x6d   : > { %s2404_s26 = scalar_lea.vmem %s2831_s19, 256  ;;  %s2590_s9 = smov [#allocation2]  }
  0x6e   : > { %p2405_p13 = scmp.ne.s32.totalorder %s2831_s19, %s2404_s26  ;;  %s2409_s8 = sshll.u32 %s2590_s9, 4  ;;  %s2410_s8 = int_to_ptr.vmem [resolvable:$false] %s2409_s8 }
  0x6f   : > { %s2411_s14 = scalar_lea.vmem %s2410_s8, 512  ;;  %p2412_p8 = scmp.lt.s32.totalorder %s2831_s19, %s2410_s8 }
  0x70   : > { %p2407_p1 = pnand %p2405_p13, %p2772_p11  ;;  %p2413_p9 = scmp.lt.s32.totalorder %s2411_s14, %s2404_s26 }
  0x72   : > { %p2408_p3 = pneg %p2407_p1  ;;  %p2414_p10 = por %p2413_p9, %p2412_p8 }
  0x74   : > { %p2415_p5 = pnand %p2414_p10, %p2408_p3 }
  0x76   : > { %2418 = shalt.err (!%p2415_p5)
}
  0x77   : > { %s2591_s22 = smov 128   ;;  %s2592_s11 = smov 8  }
  0x78   : > { %2138 = dma.hbm_to_vmem [thread:$0]  (!%p2748_p6), %s2827_s29, 256, %s2831_s19, %s327_s30, %s2591_s22, %s2591_s22, %s2592_s11  }
  0x79   : > { %s2419_s9 = scalar_lea.hbm %s2803_s27, 128  ;;  %s2424_s26 = scalar_lea.hbm %s3301_s2, 256 }
  0x7a   : > { %p2420_p12 = scmp.ne.s32.totalorder %s2803_s27, %s2419_s9  ;;  %p2425_p0 = scmp.lt.s32.totalorder %s2803_s27, %s3301_s2 }
  0x7b   : > { %p2426_p7 = scmp.lt.s32.totalorder %s2424_s26, %s2419_s9 }
  0x7c   : > { %p2422_p4 = pnand %p2420_p12, %p2772_p11 }
  0x7d   : > { %p2427_p13 = por %p2426_p7, %p2425_p0 }
  0x7e   : > { %p2423_p2 = pneg %p2422_p4 }
  0x80   : > { %p2428_p1 = pnand %p2427_p13, %p2423_p2 }
  0x82   : > { %2431 = shalt.err (!%p2428_p1)
}
  0x83   : > { %s2432_s29 = scalar_lea.vmem %s2807_s1, 128  ;;  %s2593_s19 = smov [#allocation7]  }
  0x84   : > { %p2433_p3 = scmp.ne.s32.totalorder %s2807_s1, %s2432_s29  ;;  %s2437_s30 = sshll.u32 %s2593_s19, 4  ;;  %s2438_s30 = int_to_ptr.vmem [resolvable:$false] %s2437_s30 }
  0x85   : > { %s2439_s21 = scalar_lea.vmem %s2438_s30, 256  ;;  %p2440_p10 = scmp.lt.s32.totalorder %s2807_s1, %s2438_s30 }
  0x86   : > { %p2435_p8 = pnand %p2433_p3, %p2772_p11  ;;  %p2441_p5 = scmp.lt.s32.totalorder %s2439_s21, %s2432_s29 }
  0x88   : > { %p2436_p9 = pneg %p2435_p8  ;;  %p2442_p12 = por %p2441_p5, %p2440_p10 }
  0x8a   : > { %p2443_p4 = pnand %p2442_p12, %p2436_p9 }
  0x8c   : > { %2446 = shalt.err (!%p2443_p4)
}
  0x8d   : > { %2144 = dma.hbm_to_vmem [thread:$0]  (!%p2748_p6), %s2803_s27, 128, %s2807_s1, %s2766_s28, %s2587_s15, %s2587_s15, %s2588_s18  }
  0x8e   : > { %s2888_s26 = scalar_lea.hbm %s3306_s7, %s1908_s25  ;;  %s3352_s8 = sshll.u32 %s2742_s17, 4 }
  0x8f   : > { %s393_s14 = scalar_lea.vmem [#allocation11], %s3352_s8  ;;  %s390_s19 = scalar_lea.sflag [#allocation12], %s2742_s17 }
  0x90   : > { %s400_s29 = sshll.u32 %s393_s14, 4  ;;  %s2447_s30 = scalar_lea.hbm %s2888_s26, 256  ;;  %s2892_s29 = int_to_ptr.vmem [resolvable:$true] %s400_s29 }
  0x91   : > { %p2448_p2 = scmp.ne.s32.totalorder %s2888_s26, %s2447_s30  ;;  %s2452_s15 = scalar_lea.hbm %s3306_s7, 512 }
  0x92   : > { %p2453_p13 = scmp.lt.s32.totalorder %s2888_s26, %s3306_s7  ;;  %p2454_p1 = scmp.lt.s32.totalorder %s2452_s15, %s2447_s30 }
  0x93   : > { %p2450_p0 = pnand %p2448_p2, %p2772_p11 }
  0x94   : > { %p2455_p3 = por %p2454_p1, %p2453_p13 }
  0x95   : > { %p2451_p7 = pneg %p2450_p0 }
  0x97   : > { %p2456_p8 = pnand %p2455_p3, %p2451_p7 }
  0x99   : > { %2459 = shalt.err (!%p2456_p8)
}
  0x9a   : > { %s2460_s17 = scalar_lea.vmem %s2892_s29, 256  ;;  %s2594_s25 = smov [#allocation11]  }
  0x9b   : > { %p2461_p9 = scmp.ne.s32.totalorder %s2892_s29, %s2460_s17  ;;  %s2465_s21 = sshll.u32 %s2594_s25, 4  ;;  %s2466_s21 = int_to_ptr.vmem [resolvable:$false] %s2465_s21 }
  0x9c   : > { %s2467_s9 = scalar_lea.vmem %s2466_s21, 512  ;;  %p2468_p12 = scmp.lt.s32.totalorder %s2892_s29, %s2466_s21 }
  0x9d   : > { %p2463_p10 = pnand %p2461_p9, %p2772_p11  ;;  %p2469_p4 = scmp.lt.s32.totalorder %s2467_s9, %s2460_s17 }
  0x9f   : > { %p2464_p5 = pneg %p2463_p10  ;;  %p2470_p2 = por %p2469_p4, %p2468_p12 }
  0xa1   : > { %p2471_p0 = pnand %p2470_p2, %p2464_p5 }
  0xa3   : > { %2474 = shalt.err (!%p2471_p0)
}
  0xa4   : > { %2147 = dma.hbm_to_vmem [thread:$0]  (!%p2748_p6), %s2888_s26, 256, %s2892_s29, %s390_s19, %s2591_s22, %s2591_s22, %s2592_s11  }
  0xa5   : > { %p3353_p11 = scmp.ne.s32.totalorder %s3342_s23, 0 }
  0xa6   : > { %s2921_s16 = sand.u32 (!%p3353_p11), 1, %s2573_s10   ;;  %p3354_p7 = scmp.ne.s32.totalorder (!%p3353_p11), %s3337_s20, 0 }
  0xa7   : > { %412 = sbr.rel (%p3353_p11) target bundleno = 3491 (0xda3), region = 52  ;;  %s2924_s3 = sshll.u32 (!%p3353_p11), %s2921_s16, 4 }
  0xa8   : > { %s415_s8 = scalar_lea.sflag (!%p3353_p11), [#allocation3], %s2921_s16  ;;  %s418_s24 = scalar_lea.vmem (!%p3353_p11), [#allocation2], %s2924_s3 }
  0xac   : > { %2544 = dma.done.wait (%p3354_p7), %s415_s8, 256  }
  0xad   : > { %2546 = vsyncadd (%p3354_p7), %s415_s8, 4294967040  ;;  %s423_s23 = sand.u32 1, %s2678_s13   ;;  %s2934_s22 = sshll.u32 %s2921_s16, 3 }
  0xae   : > { %s424_s11 = scalar_lea.sflag [#allocation6], %s423_s23  ;;  %s427_s26 = scalar_lea.vmem [#allocation5], %s2934_s22 }
  0xaf   : > { %2548 = dma.done.wait (%p3354_p7), %s424_s11, 256  }
  0xb0   : > { %2550 = vsyncadd (%p3354_p7), %s424_s11, 4294967040  ;;  %s436_s14 = scalar_lea.vmem [#allocation7], %s2934_s22  ;;  %p3355_p6 = scmp.eq.s32.totalorder %s2678_s13, 0 }
  0xb2   : > { %2552 = dma.done.wait (%p3355_p6), [#allocation9], 4096   ;;  %p3356_p13 = pmov %p3355_p6 }
  0xb3   : > { %s450_s29 = scalar_lea.sflag [#allocation12], %s2921_s16  ;;  %s453_s19 = scalar_lea.vmem [#allocation11], %s2924_s3 }
  0xb4   : > { %2554 = vsyncadd (%p3356_p13), [#allocation9], 4294963200 }
  0xb5   : > { %2556 = dma.done.wait (%p3354_p7), %s450_s29, 256  }
  0xb6   : > { %2558 = vsyncadd (%p3354_p7), %s450_s29, 4294967040  ;;  %v2595_v0 = vmov 0.0   ;;  %vm2596_vm0 = vmmov 0   ;;  %v2241_v1 = vld [vmem:[#allocation8 + $0xac] ss:$12 sps:$4 sm:$0xff]   ;;  %v2978_v18 = vld [vmem:[%s418_s24] sm:$0xff] }
  0xb7   : > { %1992 = vmatprep.subr.bf16.mxu1 %v2595_v0  ;;  %2008 = vmatprep.mubr.msk.bf16.mxu1 %vm2596_vm0, %v2595_v0  ;;  %v2242_v2 = vld [vmem:[#allocation8 + $0x94] ss:$12 sps:$4 sm:$0xff]   ;;  %v2243_v3 = vld [vmem:[#allocation8 + $0x7c] ss:$12 sps:$4 sm:$0xff]   ;;  %v2244_v5 = vld [vmem:[#allocation8 + $0x64] ss:$12 sps:$4 sm:$0xff]  }
  0xb8   : > { %1972 = vmatprep.subr.bf16.mxu0 %v2595_v0  ;;  %1988 = vmatprep.mubr.msk.bf16.mxu0 %vm2596_vm0, %v2595_v0  ;;  %v2250_v4 = vld [vmem:[#allocation8 + $0xa8] ss:$12 sps:$4 sm:$0xff]   ;;  %v2251_v6 = vld [vmem:[#allocation8 + $0x90] ss:$12 sps:$4 sm:$0xff]   ;;  %v2245_v7 = vld [vmem:[#allocation8 + $0x4c] ss:$12 sps:$4 sm:$0xff]  }
  0xb9   : > { %1993 = vmatpush3.bf16.msra.mxu1 %v2241_v1  ;;  %1973 = vmatpush3.bf16.msra.mxu0 %v2250_v4  ;;  %v2252_v8 = vld [vmem:[#allocation8 + $0x78] ss:$12 sps:$4 sm:$0xff]   ;;  %v2246_v9 = vld [vmem:[#allocation8 + $0x34] ss:$12 sps:$4 sm:$0xff]   ;;  %v2247_v11 = vld [vmem:[#allocation8 + $0x1c] ss:$12 sps:$4 sm:$0xff]  }
  0xba   : > { %1994 = vmatprep.subr.bf16.mxu1 %v2595_v0  ;;  %1974 = vmatprep.subr.bf16.mxu0 %v2595_v0  ;;  %v2253_v10 = vld [vmem:[#allocation8 + $0x60] ss:$12 sps:$4 sm:$0xff]   ;;  %v2254_v12 = vld [vmem:[#allocation8 + $0x48] ss:$12 sps:$4 sm:$0xff]   ;;  %v2248_v13 = vld [vmem:[#allocation8 + $0x4] ss:$12 sps:$4 sm:$0xff]  }
  0xbb   : > { %v2255_v14 = vld [vmem:[#allocation8 + $0x30] ss:$12 sps:$4 sm:$0xff]   ;;  %v2249_v15 = vld [vmem:[%s427_s26] sm:$0xff]   ;;  %vm902_vm1 = vcmask 261120   ;;  %vm951_vm2 = vcmask 130048   ;;  %s2597_s27 = smov 96  }
  0xbc   : > { %v2256_v16 = vld [vmem:[#allocation8 + $0x18] ss:$12 sps:$4 sm:$0xff]   ;;  %v2257_v17 = vld [vmem:[#allocation8] ss:$12 sps:$4 sm:$0xff]   ;;  %v2258_v42 = vld [vmem:[#allocation8 + $0xb0] ss:$12 sps:$4 sm:$0xff]  }
  0xbd   : > { %1995 = vmatpush3.bf16.msra.mxu1 %v2242_v2  ;;  %1975 = vmatpush3.bf16.msra.mxu0 %v2251_v6  ;;  %v2982_v19 = vld [vmem:[%s418_s24 + $0x8] sm:$0xff]  ;;  %v1861_v21 = vld [vmem:[%s3303_s4 + $0x1] ss:$0 sm:$0xff]  ;;  %v1852_v28 = vld [vmem:[%s3303_s4] ss:$0 sm:$0xff]  ;;  %s2598_s17 = smov 64  }
  0xbe   : > { %1996 = vmatprep.subr.bf16.mxu1 %v2595_v0  ;;  %1976 = vmatprep.subr.bf16.mxu0 %v2595_v0  ;;  %v517_v20 = vpack.c.bf16 %v2982_v19, %v2978_v18  ;;  %v2259_v43 = vld [vmem:[#allocation8 + $0x98] ss:$12 sps:$4 sm:$0xff]   ;;  %v2260_v44 = vld [vmem:[#allocation8 + $0x80] ss:$12 sps:$4 sm:$0xff]   ;;  %v2261_v45 = vld [vmem:[#allocation8 + $0x68] ss:$12 sps:$4 sm:$0xff]  }
  0xbf   : > { %v2262_v46 = vld [vmem:[#allocation8 + $0x50] ss:$12 sps:$4 sm:$0xff]   ;;  %v2263_v47 = vld [vmem:[#allocation8 + $0x38] ss:$12 sps:$4 sm:$0xff]   ;;  %v2264_v48 = vld [vmem:[#allocation8 + $0x20] ss:$12 sps:$4 sm:$0xff]  }
  0xc0   : > { %v2265_v49 = vld [vmem:[#allocation8 + $0x8] ss:$12 sps:$4 sm:$0xff]   ;;  %s2599_s25 = smov 32   ;;  %vm1455_vm3 = vcmask 523264   ;;  %vm1458_vm4 = vcmask 785408   ;;  %s2600_s8 = smov 16  }
  0xc1   : > { %1997 = vmatpush3.bf16.msra.mxu1 %v2243_v3  ;;  %1977 = vmatpush3.bf16.msra.mxu0 %v2252_v8  ;;  %v2266_v50 = vld [vmem:[%s436_s14] sm:$0xff]   ;;  %v3018_v52 = vld [vmem:[%s453_s19] sm:$0xff]  ;;  %s2601_s24 = smov 48   ;;  %vm1415_vm5 = vcmask 392192   ;;  %s1915_s23 = sshll.u32 %s2678_s13, 7  ;;  %vm1426_vm6 = vcmask 519168  }
  0xc2   : > { %1998 = vmatprep.subr.bf16.mxu1 %v2595_v0  ;;  %1978 = vmatprep.subr.bf16.mxu0 %v2595_v0  ;;  %v3023_v57 = vld [vmem:[%s453_s19 + $0x8] sm:$0xff]  ;;  %s507_s11 = scalar_lea.vmem [#allocation14], %s2934_s22  ;;  %s3357_s26 = sld [smem:[#allocation26_spill]] }
  0xc3   : > { %s1636_s14 = sshll.u32 %s507_s11, 4  ;;  %s3358_s20 = sld [smem:[#allocation31_spill]]  ;;  %s3220_s14 = int_to_ptr.vmem [resolvable:$true] %s1636_s14 }
  0xc4   : > { %s1607_s22 = scalar_lea.sflag [#allocation15], %s2921_s16  ;;  %s2475_s1 = scalar_lea.vmem %s3220_s14, 128 }
  0xc5   : > { %1999 = vmatpush3.bf16.msra.mxu1 %v2244_v5  ;;  %1979 = vmatpush3.bf16.msra.mxu0 %v2253_v10  ;;  %p2476_p1 = scmp.ne.s32.totalorder %s3220_s14, %s2475_s1  ;;  %s2602_s28 = smov [#allocation14]  }
  0xc6   : > { %2000 = vmatprep.subr.bf16.mxu1 %v2595_v0  ;;  %1980 = vmatprep.subr.bf16.mxu0 %v2595_v0  ;;  %s2479_s15 = sshll.u32 %s2602_s28, 4  ;;  %s2480_s15 = int_to_ptr.vmem [resolvable:$false] %s2479_s15 }
  0xc7   : > { %s2481_s18 = scalar_lea.vmem %s2480_s15, 256  ;;  %p2482_p10 = scmp.lt.s32.totalorder %s3220_s14, %s2480_s15 }
  0xc8   : > { %p3359_p3 = scmp.ne.s32.totalorder %s3357_s26, 0  ;;  %p2483_p5 = scmp.lt.s32.totalorder %s2481_s18, %s2475_s1 }
  0xc9   : > { %2001 = vmatpush3.bf16.msra.mxu1 %v2245_v7  ;;  %1981 = vmatpush3.bf16.msra.mxu0 %v2254_v12  ;;  %s3218_s30 = scalar_lea.hbm %s3358_s20, %s1915_s23 }
  0xca   : > { %2002 = vmatprep.subr.bf16.mxu1 %v2595_v0  ;;  %1982 = vmatprep.subr.bf16.mxu0 %v2595_v0  ;;  %p2477_p8 = pnand %p2476_p1, %p3359_p3  ;;  %p2484_p12 = por %p2483_p5, %p2482_p10 }
  0xcc   : > { %p2478_p9 = pneg %p2477_p8 }
  0xcd   : > { %2003 = vmatpush3.bf16.msra.mxu1 %v2246_v9  ;;  %1983 = vmatpush3.bf16.msra.mxu0 %v2255_v14 }
  0xce   : > { %2004 = vmatprep.subr.bf16.mxu1 %v2595_v0  ;;  %1984 = vmatprep.subr.bf16.mxu0 %v2595_v0  ;;  %p2485_p4 = pnand %p2484_p12, %p2478_p9 }
  0xd1   : > { %2005 = vmatpush3.bf16.msra.mxu1 %v2247_v11  ;;  %1985 = vmatpush3.bf16.msra.mxu0 %v2256_v16 }
  0xd2   : > { %2006 = vmatprep.subr.bf16.mxu1 %v2595_v0  ;;  %1986 = vmatprep.subr.bf16.mxu0 %v2595_v0 }
  0xd5   : > { %2007 = vmatpush3.bf16.msra.mxu1 %v2248_v13  ;;  %1987 = vmatpush3.bf16.msra.mxu0 %v2257_v17 }
  0xd6   : > { %2032 = vmatprep.subr.bf16.mxu1 %v2595_v0  ;;  %2012 = vmatprep.subr.bf16.mxu0 %v2595_v0 }
  0xd8   : > { %2009 = vmatmul.mubr.bf16.vlgmr.msra.gmra.mxu1 %v2249_v15  ;;  %1989 = vmatmul.mubr.bf16.vlgmr.msra.gmra.mxu0 %v517_v20 }
  0xd9   : > { %2036 = vmatprep.mubr.msk.bf16.mxu1 %vm2596_vm0, %v2595_v0  ;;  %2028 = vmatprep.mubr.msk.bf16.mxu0 %vm2596_vm0, %v2595_v0 }
  0xda   : > { %2013 = vmatpush3.bf16.msra.mxu0 %v2258_v42 }
  0xdb   : > { %2014 = vmatprep.subr.bf16.mxu0 %v2595_v0 }
  0xde   : > { %2015 = vmatpush3.bf16.msra.mxu0 %v2259_v43 }
  0xdf   : > { %2016 = vmatprep.subr.bf16.mxu0 %v2595_v0 }
  0xe2   : > { %2017 = vmatpush3.bf16.msra.mxu0 %v2260_v44 }
  0xe3   : > { %2018 = vmatprep.subr.bf16.mxu0 %v2595_v0 }
  0xe6   : > { %2019 = vmatpush3.bf16.msra.mxu0 %v2261_v45 }
  0xe7   : > { %2020 = vmatprep.subr.bf16.mxu0 %v2595_v0 }
  0xea   : > { %2021 = vmatpush3.bf16.msra.mxu0 %v2262_v46 }
  0xeb   : > { %2022 = vmatprep.subr.bf16.mxu0 %v2595_v0 }
  0xee   : > { %2023 = vmatpush3.bf16.msra.mxu0 %v2263_v47 }
  0xef   : > { %2024 = vmatprep.subr.bf16.mxu0 %v2595_v0 }
  0xf2   : > { %2025 = vmatpush3.bf16.msra.mxu0 %v2264_v48 }
  0xf3   : > { %2026 = vmatprep.subr.bf16.mxu0 %v2595_v0 }
  0xf6   : > { %2027 = vmatpush3.bf16.msra.mxu0 %v2265_v49 }
  0xf7   : > { %2088 = vmatprep.subr.bf16.mxu0 %v2595_v0 }
  0xf9   : > { %2029 = vmatmul.mubr.bf16.vlgmr.msra.gmra.mxu0 %v2266_v50 }
  0xfa   : > { %2104 = vmatprep.mubr.msk.bf16.mxu0 %vm2596_vm0, %v2595_v0 }
 0x198   : > { %v741_v22 = vpop.f32.mrf.mxu1  ;;  %v623_v29 = vpop.f32.mrf.mxu0 }
 0x199   : > { %v742_v23 = vadd.f32 %v1861_v21, %v741_v22  ;;  %v624_v31 = vadd.f32 %v1852_v28, %v623_v29 }
 0x19a   : > { %v2010_v24 = vpop.f32.mrf.mxu1  ;;  %v1990_v30 = vpop.f32.mrf.mxu0 }
 0x19b   : > { %866 = vxpose.xlu0.b32.start [1/2] (short) %v742_v23, 128 }
 0x19c   : > { %v744_v25 = vpop.f32.mrf.mxu1  ;;  %v626_v32 = vpop.f32.mrf.mxu0 }
 0x19d   : > { %v745_v26 = vadd.f32 %v1861_v21, %v744_v25  ;;  %v627_v33 = vadd.f32 %v1852_v28, %v626_v32 }
 0x19e   : > { %v2011_v27 = vpop.f32.mrf.mxu1  ;;  %v1991_v34 = vpop.f32.mrf.mxu0 }
 0x19f   : > { %867 = vxpose.xlu0.b32.end [2/2] (short) %v745_v26, 128  ;;  %v2996_v35 = vpack.c.bf16 %v627_v33, %v624_v31  ;;  %v1871_v26 = vld [vmem:[%s3303_s4 + $0x2] ss:$0 sm:$0xff] }
 0x1b9   : > { %v859_v27 = vpop.f32.mrf.mxu0 }
 0x1ba   : > { %v860_v29 = vadd.f32 %v1871_v26, %v859_v27 }
 0x1bb   : > { %v2030_v28 = vpop.f32.mrf.mxu0 }
 0x1bd   : > { %v862_v30 = vpop.f32.mrf.mxu0 }
 0x1be   : > { %v863_v31 = vadd.f32 %v1871_v26, %v862_v30 }
 0x1bf   : > { %v2031_v32 = vpop.f32.mrf.mxu0 }
 0x1c0   : > { %v3051_v33 = vpack.c.bf16 %v863_v31, %v860_v29 }
 0x217   : > { %v882_v36 = vpop.trf.xlu0 }
 0x21b   : > { %v883_v37 = vpop.trf.xlu0 }
 0x21c   : > { %v899_v41 = vpack.c.bf16 %v883_v37, %v882_v36 }
 0x21f   : > { %v884_v38 = vpop.trf.xlu0 }
 0x223   : > { %v885_v39 = vpop.trf.xlu0 }
 0x224   : > { %v900_v40 = vpack.c.bf16 %v885_v39, %v884_v38 }
 0x226   : > { %2033 = vmatpush3.bf16.msra.mxu1 %v900_v40 }
 0x227   : > { %2034 = vmatprep.subr.bf16.mxu1 %v2595_v0  ;;  %v886_v63 = vpop.trf.xlu0 }
 0x22a   : > { %2035 = vmatpush3.bf16.msra.mxu1 %v899_v41 }
 0x22b   : > { %2040 = vmatprep.subr.bf16.mxu1 %v2595_v0  ;;  %v887_v1 = vpop.trf.xlu0 }
 0x22c   : > { %v1019_v2 = vpack.c.bf16 %v887_v1, %v886_v63 }
 0x22d   : > { %2037 = vmatmul.mubr.msk.bf16.vlgmr.msra.gmra.mxu1 %vm902_vm1, %v2996_v35 }
 0x22e   : > { %2042 = vmatprep.mubr.msk.bf16.mxu1 %vm2596_vm0, %v2595_v0  ;;  %2041 = vmatpush3.bf16.msra.mxu1 %v3051_v33 }
 0x22f   : > { %v888_v3 = vpop.trf.xlu0  ;;  %2046 = vmatprep.subr.bf16.mxu1 %v2595_v0 }
 0x233   : > { %v889_v4 = vpop.trf.xlu0 }
 0x234   : > { %v1020_v44 = vpack.c.bf16 %v889_v4, %v888_v3 }
 0x237   : > { %v3028_v5 = vpop.trf.xlu0 }
 0x23b   : > { %v3030_v6 = vpop.trf.xlu0 }
 0x23c   : > { %v1143_v7 = vpack.c.bf16 %v3030_v6, %v3028_v5 }
 0x23f   : > { %v3034_v8 = vpop.trf.xlu0 }
 0x243   : > { %v3036_v9 = vpop.trf.xlu0 }
 0x244   : > { %v1144_v10 = vpack.c.bf16 %v3036_v9, %v3034_v8 }
 0x247   : > { %v3040_v11 = vpop.trf.xlu0 }
 0x24b   : > { %v3042_v12 = vpop.trf.xlu0 }
 0x24c   : > { %v1265_v13 = vpack.c.bf16 %v3042_v12, %v3040_v11 }
 0x24f   : > { %v3057_v34 = vpop.trf.xlu0 }
 0x253   : > { %v3059_v36 = vpop.trf.xlu0 }
 0x2ed   : > { %v940_v51 = vpop.f32.mrf.mxu1 }
 0x2ee   : > { %v947_v53 = vmul.f32 0.17677669, %v940_v51 }
 0x2ef   : > { %v2038_v54 = vpop.f32.mrf.mxu1 }
 0x2f0   : > { %v949_v55 = vadd.f32 %v947_v53, %v3018_v52 }
 0x2f1   : > { %v943_v56 = vpop.f32.mrf.mxu1 }
 0x2f2   : > { %v948_v58 = vmul.f32 0.17677669, %v943_v56  ;;  %v952_v59 = vsel %vm951_vm2, %v949_v55, -inf }
 0x2f3   : > { %953 = vmax.xlane.f32.xlu1 %v952_v59  ;;  %v2039_v60 = vpop.f32.mrf.mxu1 }
 0x2f4   : > { %v950_v61 = vadd.f32 %v948_v58, %v3023_v57 }
 0x2f6   : > { %v955_v62 = vsel %vm951_vm2, %v950_v61, -inf }
 0x2f7   : > { %956 = vmax.xlane.f32.xlu1 %v955_v62 }
 0x37c   : > { %v954_v14 = vpop.xlane.xlu1 %953 }
 0x37d   : > { %v958_v15 = vsub.f32 %v949_v55, %v954_v14 }
 0x37f   : > { %v960_v16 = vmul.f32 1.442695, %v958_v15 }
 0x380   : > { %v957_v17 = vpop.xlane.xlu1 %956 }
 0x381   : > { %2275 = vpow2.f32 %v960_v16  ;;  %v959_v20 = vsub.f32 %v950_v61, %v957_v17 }
 0x383   : > { %v962_v21 = vmul.f32 1.442695, %v959_v20 }
 0x385   : > { %2277 = vpow2.f32 %v962_v21 }
 0x38e   : > { %v2276_v22 = vpop.eup %2275 }
 0x38f   : > { %v964_v23 = vsel %vm951_vm2, %v2276_v22, 0.0 }
 0x390   : > { %965 = vadd.xlane.f32.xlu0 %v964_v23 }
 0x392   : > { %v2278_v24 = vpop.eup %2277 }
 0x393   : > { %v967_v25 = vsel %vm951_vm2, %v2278_v24, 0.0 }
 0x394   : > { %968 = vadd.xlane.f32.xlu1 %v967_v25 }
 0x3a5   : > { %1022 = vrot.lane.b32.xlu1 %v2996_v35, %s2597_s27 }
 0x419   : > { %v966_v37 = vpop.xlane.xlu0 %965 }
 0x41a   : > { %2279 = vrcp.f32 %v966_v37 }
 0x41d   : > { %v969_v38 = vpop.xlane.xlu1 %968 }
 0x41e   : > { %2281 = vrcp.f32 %v969_v38 }
 0x421   : > { %v1023_v45 = vpop.permute.xlu1 %1022 }
 0x427   : > { %v2280_v39 = vpop.eup %2279 }
 0x428   : > { %v3061_v41 = vmul.f32 %v2280_v39, %v2276_v22 }
 0x42b   : > { %v2282_v40 = vpop.eup %2281 }
 0x42c   : > { %v3063_v42 = vmul.f32 %v2282_v40, %v2278_v24 }
 0x42e   : > { %v974_v43 = vpack.c.bf16 %v3063_v42, %v3061_v41 }
 0x430   : > { %2043 = vmatmul.mubr.msk.bf16.vlgmr.msra.gmra.mxu1 %vm951_vm2, %v974_v43 }
 0x431   : > { %2047 = vmatpush3.bf16.msra.mxu1 %v1020_v44  ;;  %2050 = vmatprep.mubr.msk.bf16.mxu1 %vm2596_vm0, %v2595_v0 }
 0x432   : > { %2048 = vmatprep.subr.bf16.mxu1 %v2595_v0 }
 0x435   : > { %2049 = vmatpush3.bf16.msra.mxu1 %v1019_v2 }
 0x436   : > { %2054 = vmatprep.subr.bf16.mxu1 %v2595_v0 }
 0x438   : > { %2051 = vmatmul.mubr.msk.bf16.vlgmr.msra.gmra.mxu1 %vm902_vm1, %v1023_v45 }
 0x439   : > { %2056 = vmatprep.mubr.msk.bf16.mxu1 %vm2596_vm0, %v2595_v0 }
 0x4f0   : > { %v3075_v46 = vpop.f32.mrf.mxu1 }
 0x4f2   : > { %v2044_v47 = vpop.f32.mrf.mxu1 }
 0x4f4   : > { %v3077_v48 = vpop.f32.mrf.mxu1 }
 0x4f6   : > { %v2045_v49 = vpop.f32.mrf.mxu1 }
 0x4f8   : > { %v1061_v50 = vpop.f32.mrf.mxu1 }
 0x4f9   : > { %v1068_v51 = vmul.f32 0.17677669, %v1061_v50 }
 0x4fa   : > { %v2052_v53 = vpop.f32.mrf.mxu1 }
 0x4fb   : > { %v1070_v54 = vadd.f32 %v1068_v51, %v3018_v52 }
 0x4fc   : > { %v1064_v55 = vpop.f32.mrf.mxu1 }
 0x4fd   : > { %v1069_v56 = vmul.f32 0.17677669, %v1064_v55  ;;  %v1072_v58 = vsel %vm951_vm2, %v1070_v54, -inf }
 0x4fe   : > { %1073 = vmax.xlane.f32.xlu1 %v1072_v58  ;;  %v2053_v59 = vpop.f32.mrf.mxu1 }
 0x4ff   : > { %v1071_v60 = vadd.f32 %v1069_v56, %v3023_v57 }
 0x501   : > { %v1075_v61 = vsel %vm951_vm2, %v1071_v60, -inf }
 0x502   : > { %1076 = vmax.xlane.f32.xlu1 %v1075_v61 }
 0x587   : > { %v1074_v62 = vpop.xlane.xlu1 %1073 }
 0x588   : > { %v1078_v63 = vsub.f32 %v1070_v54, %v1074_v62 }
 0x58a   : > { %v1080_v1 = vmul.f32 1.442695, %v1078_v63 }
 0x58b   : > { %v1077_v2 = vpop.xlane.xlu1 %1076 }
 0x58c   : > { %2283 = vpow2.f32 %v1080_v1  ;;  %v1079_v3 = vsub.f32 %v1071_v60, %v1077_v2 }
 0x58e   : > { %v1082_v4 = vmul.f32 1.442695, %v1079_v3 }
 0x590   : > { %2285 = vpow2.f32 %v1082_v4  ;;  %v1266_v4 = vpack.c.bf16 %v3059_v36, %v3057_v34 }
 0x599   : > { %v2284_v14 = vpop.eup %2283 }
 0x59a   : > { %v1084_v15 = vsel %vm951_vm2, %v2284_v14, 0.0 }
 0x59b   : > { %1085 = vadd.xlane.f32.xlu1 %v1084_v15 }
 0x59d   : > { %v2286_v16 = vpop.eup %2285 }
 0x59e   : > { %v1087_v17 = vsel %vm951_vm2, %v2286_v16, 0.0 }
 0x59f   : > { %1088 = vadd.xlane.f32.xlu1 %v1087_v17 }
 0x5b0   : > { %1096 = vrot.lane.b32.xlu1 %v3051_v33, %s2597_s27 }
 0x5b4   : > { %1145 = vrot.lane.b32.xlu1 %v2996_v35, %s2598_s17 }
 0x624   : > { %v1086_v20 = vpop.xlane.xlu1 %1085 }
 0x625   : > { %2287 = vrcp.f32 %v1086_v20 }
 0x628   : > { %v1089_v21 = vpop.xlane.xlu1 %1088 }
 0x629   : > { %2289 = vrcp.f32 %v1089_v21 }
 0x62c   : > { %v1097_v22 = vpop.permute.xlu1 %1096 }
 0x62d   : > { %2055 = vmatpush3.bf16.msra.mxu1 %v1097_v22 }
 0x62e   : > { %2060 = vmatprep.subr.bf16.mxu1 %v2595_v0 }
 0x630   : > { %v1146_v29 = vpop.permute.xlu1 %1145 }
 0x632   : > { %v2288_v23 = vpop.eup %2287 }
 0x633   : > { %v3090_v25 = vmul.f32 %v2288_v23, %v2284_v14 }
 0x636   : > { %v2290_v24 = vpop.eup %2289 }
 0x637   : > { %v3092_v26 = vmul.f32 %v2290_v24, %v2286_v16 }
 0x639   : > { %v1094_v27 = vpack.c.bf16 %v3092_v26, %v3090_v25  ;;  %v2226_v28 = vpack.i.bf16 %v3092_v26, %v3090_v25 }
 0x63b   : > { %2057 = vmatmul.mubr.msk.bf16.vlgmr.msra.gmra.mxu1 %vm951_vm2, %v1094_v27 }
 0x63c   : > { %2061 = vmatpush3.bf16.msra.mxu1 %v1144_v10  ;;  %2064 = vmatprep.mubr.msk.bf16.mxu1 %vm2596_vm0, %v2595_v0 }
 0x63d   : > { %2062 = vmatprep.subr.bf16.mxu1 %v2595_v0 }
 0x640   : > { %2063 = vmatpush3.bf16.msra.mxu1 %v1143_v7 }
 0x641   : > { %2068 = vmatprep.subr.bf16.mxu1 %v2595_v0 }
 0x643   : > { %2065 = vmatmul.mubr.msk.bf16.vlgmr.msra.gmra.mxu1 %vm902_vm1, %v1146_v29 }
 0x644   : > { %2070 = vmatprep.mubr.msk.bf16.mxu1 %vm2596_vm0, %v2595_v0 }
 0x6fb   : > { %v3112_v30 = vpop.f32.mrf.mxu1 }
 0x6fd   : > { %v2058_v8 = vpop.f32.mrf.mxu1 }
 0x6ff   : > { %v3114_v9 = vpop.f32.mrf.mxu1 }
 0x700   : > { %v2211_v10 = vpack.i.bf16 %v3114_v9, %v3112_v30 }
 0x701   : > { %v2059_v31 = vpop.f32.mrf.mxu1 }
 0x703   : > { %v1184_v32 = vpop.f32.mrf.mxu1 }
 0x704   : > { %v1191_v5 = vmul.f32 0.17677669, %v1184_v32 }
 0x705   : > { %v2066_v6 = vpop.f32.mrf.mxu1 }
 0x706   : > { %v1193_v7 = vadd.f32 %v1191_v5, %v3018_v52 }
 0x707   : > { %v1187_v37 = vpop.f32.mrf.mxu1 }
 0x708   : > { %v1192_v38 = vmul.f32 0.17677669, %v1187_v37  ;;  %v1195_v39 = vsel %vm951_vm2, %v1193_v7, -inf }
 0x709   : > { %1196 = vmax.xlane.f32.xlu1 %v1195_v39  ;;  %v2067_v40 = vpop.f32.mrf.mxu1 }
 0x70a   : > { %v1194_v43 = vadd.f32 %v1192_v38, %v3023_v57 }
 0x70c   : > { %v1198_v44 = vsel %vm951_vm2, %v1194_v43, -inf }
 0x70d   : > { %1199 = vmax.xlane.f32.xlu0 %v1198_v44 }
 0x71a   : > { %1267 = vrot.lane.b32.xlu1 %v2996_v35, %s2599_s25 }
 0x792   : > { %v1197_v45 = vpop.xlane.xlu1 %1196 }
 0x793   : > { %v1201_v47 = vsub.f32 %v1193_v7, %v1197_v45 }
 0x795   : > { %v1203_v49 = vmul.f32 1.442695, %v1201_v47  ;;  %v2267_v47 = vld [vmem:[#allocation10 + $0x38] sm:$0xff]  }
 0x796   : > { %v1200_v50 = vpop.xlane.xlu0 %1199  ;;  %v1268_v14 = vpop.permute.xlu1 %1267  ;;  %2089 = vmatpush3.bf16.msra.mxu0 %v2267_v47 }
 0x797   : > { %2291 = vpow2.f32 %v1203_v49  ;;  %v1202_v51 = vsub.f32 %v1194_v43, %v1200_v50  ;;  %v2268_v49 = vld [vmem:[#allocation10 + $0x30] sm:$0xff]   ;;  %2090 = vmatprep.subr.bf16.mxu0 %v2595_v0  ;;  %v2269_v50 = vld [vmem:[#allocation10 + $0x28] sm:$0xff]  }
 0x799   : > { %v1205_v53 = vmul.f32 1.442695, %v1202_v51  ;;  %v2270_v51 = vld [vmem:[#allocation10 + $0x20] sm:$0xff]  }
 0x79a   : > { %2091 = vmatpush3.bf16.msra.mxu0 %v2268_v49 }
 0x79b   : > { %2293 = vpow2.f32 %v1205_v53  ;;  %2092 = vmatprep.subr.bf16.mxu0 %v2595_v0  ;;  %v2271_v53 = vld [vmem:[#allocation10 + $0x18] sm:$0xff]  }
 0x79e   : > { %2093 = vmatpush3.bf16.msra.mxu0 %v2269_v50 }
 0x79f   : > { %2094 = vmatprep.subr.bf16.mxu0 %v2595_v0 }
 0x7a2   : > { %2095 = vmatpush3.bf16.msra.mxu0 %v2270_v51 }
 0x7a3   : > { %2096 = vmatprep.subr.bf16.mxu0 %v2595_v0 }
 0x7a4   : > { %v2292_v54 = vpop.eup %2291 }
 0x7a5   : > { %v1207_v55 = vsel %vm951_vm2, %v2292_v54, 0.0 }
 0x7a6   : > { %1208 = vadd.xlane.f32.xlu0 %v1207_v55  ;;  %2097 = vmatpush3.bf16.msra.mxu0 %v2271_v53  ;;  %v2273_v55 = vld [vmem:[#allocation10 + $0x8] sm:$0xff]  }
 0x7a7   : > { %2098 = vmatprep.subr.bf16.mxu0 %v2595_v0 }
 0x7a8   : > { %v2294_v56 = vpop.eup %2293 }
 0x7a9   : > { %v1210_v58 = vsel %vm951_vm2, %v2294_v56, 0.0 }
 0x7aa   : > { %1211 = vadd.xlane.f32.xlu0 %v1210_v58 }
 0x7c0   : > { %1218 = vrot.lane.b32.xlu0 %v3051_v33, %s2598_s17 }
 0x82f   : > { %v1209_v35 = vpop.xlane.xlu0 %1208 }
 0x830   : > { %2295 = vrcp.f32 %v1209_v35 }
 0x833   : > { %v1212_v59 = vpop.xlane.xlu0 %1211 }
 0x834   : > { %2297 = vrcp.f32 %v1212_v59 }
 0x837   : > { %v1219_v60 = vpop.permute.xlu0 %1218 }
 0x838   : > { %2069 = vmatpush3.bf16.msra.mxu1 %v1219_v60 }
 0x839   : > { %2074 = vmatprep.subr.bf16.mxu1 %v2595_v0 }
 0x83d   : > { %v2296_v61 = vpop.eup %2295 }
 0x83e   : > { %v3129_v63 = vmul.f32 %v2296_v61, %v2292_v54  ;;  %v2272_v54 = vld [vmem:[#allocation10 + $0x10] sm:$0xff]  }
 0x83f   : > { %2099 = vmatpush3.bf16.msra.mxu0 %v2272_v54 }
 0x840   : > { %2100 = vmatprep.subr.bf16.mxu0 %v2595_v0 }
 0x841   : > { %v2298_v62 = vpop.eup %2297 }
 0x842   : > { %v3131_v1 = vmul.f32 %v2298_v62, %v2294_v56  ;;  %v2274_v56 = vld [vmem:[#allocation10] sm:$0xff]  }
 0x843   : > { %2101 = vmatpush3.bf16.msra.mxu0 %v2273_v55 }
 0x844   : > { %v1217_v2 = vpack.c.bf16 %v3131_v1, %v3129_v63  ;;  %v2231_v3 = vpack.i.bf16 %v3131_v1, %v3129_v63  ;;  %2102 = vmatprep.subr.bf16.mxu0 %v2595_v0 }
 0x846   : > { %2071 = vmatmul.mubr.msk.bf16.vlgmr.msra.gmra.mxu1 %vm951_vm2, %v1217_v2 }
 0x847   : > { %2075 = vmatpush3.bf16.msra.mxu1 %v1266_v4  ;;  %2078 = vmatprep.mubr.msk.bf16.mxu1 %vm2596_vm0, %v2595_v0 }
 0x848   : > { %2076 = vmatprep.subr.bf16.mxu1 %v2595_v0  ;;  %2103 = vmatpush3.bf16.msra.mxu0 %v2274_v56 }
 0x84b   : > { %2077 = vmatpush3.bf16.msra.mxu1 %v1265_v13 }
 0x84c   : > { %2082 = vmatprep.subr.bf16.mxu1 %v2595_v0 }
 0x84e   : > { %2079 = vmatmul.mubr.msk.bf16.vlgmr.msra.gmra.mxu1 %vm902_vm1, %v1268_v14 }
 0x84f   : > { %2084 = vmatprep.mubr.msk.bf16.mxu1 %vm2596_vm0, %v2595_v0 }
 0x906   : > { %v1258_v34 = vpop.f32.mrf.mxu1 }
 0x908   : > { %v2072_v36 = vpop.f32.mrf.mxu1 }
 0x90a   : > { %v1261_v15 = vpop.f32.mrf.mxu1 }
 0x90b   : > { %v2216_v16 = vpack.i.bf16 %v1261_v15, %v1258_v34 }
 0x90c   : > { %v2073_v17 = vpop.f32.mrf.mxu1 }
 0x90e   : > { %v1306_v20 = vpop.f32.mrf.mxu1 }
 0x90f   : > { %v1313_v21 = vmul.f32 0.17677669, %v1306_v20 }
 0x910   : > { %v2080_v22 = vpop.f32.mrf.mxu1 }
 0x911   : > { %v1315_v23 = vadd.f32 %v1313_v21, %v3018_v52 }
 0x912   : > { %v1309_v11 = vpop.f32.mrf.mxu1 }
 0x913   : > { %v1314_v12 = vmul.f32 0.17677669, %v1309_v11  ;;  %v1317_v13 = vsel %vm951_vm2, %v1315_v23, -inf }
 0x914   : > { %1318 = vmax.xlane.f32.xlu0 %v1317_v13  ;;  %v2081_v24 = vpop.f32.mrf.mxu1  ;;  %v1891_v13 = vld [vmem:[%s3305_s6] ss:$0 sm:$0xff] }
 0x915   : > { %v1316_v27 = vadd.f32 %v1314_v12, %v3023_v57 }
 0x917   : > { %v1320_v29 = vsel %vm951_vm2, %v1316_v27, -inf }
 0x918   : > { %1321 = vmax.xlane.f32.xlu1 %v1320_v29 }
 0x929   : > { %2212 = vrot.lane.b32.xlu1 %v2211_v10, %s2599_s25 }
 0x99d   : > { %v1319_v8 = vpop.xlane.xlu0 %1318 }
 0x99e   : > { %v1323_v31 = vsub.f32 %v1315_v23, %v1319_v8 }
 0x9a0   : > { %v1325_v32 = vmul.f32 1.442695, %v1323_v31 }
 0x9a1   : > { %v1322_v52 = vpop.xlane.xlu1 %1321 }
 0x9a2   : > { %2299 = vpow2.f32 %v1325_v32  ;;  %v1324_v5 = vsub.f32 %v1316_v27, %v1322_v52 }
 0x9a4   : > { %v1327_v6 = vmul.f32 1.442695, %v1324_v5 }
 0x9a5   : > { %v2213_v62 = vpop.permute.xlu1 %2212 }
 0x9a6   : > { %2301 = vpow2.f32 %v1327_v6  ;;  %v2215_v4 = vunpack.i.h.bf16 %v2213_v62  ;;  %v2214_v14 = vunpack.i.l.bf16 %v2213_v62 }
 0x9a8   : > { %v1454_v0 = vsel %vm902_vm1, %v3077_v48, %v2215_v4 }
 0x9af   : > { %v2300_v7 = vpop.eup %2299 }
 0x9b0   : > { %v1329_v37 = vsel %vm951_vm2, %v2300_v7, 0.0 }
 0x9b1   : > { %1330 = vadd.xlane.f32.xlu0 %v1329_v37 }
 0x9b3   : > { %v2302_v57 = vpop.eup %2301 }
 0x9b4   : > { %v1332_v38 = vsel %vm951_vm2, %v2302_v57, 0.0 }
 0x9b5   : > { %1333 = vadd.xlane.f32.xlu0 %v1332_v38 }
 0x9cb   : > { %1340 = vrot.lane.b32.xlu0 %v3051_v33, %s2599_s25 }
 0x9cf   : > { %2217 = vrot.lane.b32.xlu0 %v2216_v16, %s2598_s17  ;;  %v1453_v16 = vsel %vm902_vm1, %v3075_v46, %v2214_v14 }
 0xa3a   : > { %v1331_v30 = vpop.xlane.xlu0 %1330 }
 0xa3b   : > { %2303 = vrcp.f32 %v1331_v30 }
 0xa3e   : > { %v1334_v9 = vpop.xlane.xlu0 %1333 }
 0xa3f   : > { %2305 = vrcp.f32 %v1334_v9 }
 0xa42   : > { %v1341_v10 = vpop.permute.xlu0 %1340 }
 0xa43   : > { %2083 = vmatpush3.bf16.msra.mxu1 %v1341_v10 }
 0xa46   : > { %v2218_v2 = vpop.permute.xlu0 %2217 }
 0xa47   : > { %v2220_v34 = vunpack.i.h.bf16 %v2218_v2  ;;  %v2219_v36 = vunpack.i.l.bf16 %v2218_v2 }
 0xa48   : > { %v2304_v39 = vpop.eup %2303 }
 0xa49   : > { %v3163_v43 = vmul.f32 %v2304_v39, %v2300_v7  ;;  %v1456_v21 = vsel %vm1455_vm3, %v1453_v16, %v2219_v36  ;;  %v1457_v22 = vsel %vm1455_vm3, %v1454_v0, %v2220_v34 }
 0xa4c   : > { %v2306_v40 = vpop.eup %2305 }
 0xa4d   : > { %v3165_v44 = vmul.f32 %v2306_v40, %v2302_v57 }
 0xa4f   : > { %v1339_v45 = vpack.c.bf16 %v3165_v44, %v3163_v43  ;;  %v2236_v33 = vpack.i.bf16 %v3165_v44, %v3163_v43 }
 0xa51   : > { %2085 = vmatmul.mubr.msk.bf16.vlgmr.msra.gmra.mxu1 %vm951_vm2, %v1339_v45 }
 0xb11   : > { %v1380_v58 = vpop.f32.mrf.mxu1 }
 0xb13   : > { %v2086_v35 = vpop.f32.mrf.mxu1 }
 0xb15   : > { %v1383_v59 = vpop.f32.mrf.mxu1 }
 0xb16   : > { %v2221_v60 = vpack.i.bf16 %v1383_v59, %v1380_v58 }
 0xb17   : > { %v2087_v61 = vpop.f32.mrf.mxu1 }
 0xb18   : > { %2222 = vrot.lane.b32.xlu1 %v2221_v60, %s2597_s27 }
 0xb8a   : > { %v2223_v15 = vpop.permute.xlu1 %2222 }
 0xb8b   : > { %v2225_v17 = vunpack.i.h.bf16 %v2223_v15  ;;  %v2224_v20 = vunpack.i.l.bf16 %v2223_v15 }
 0xb8d   : > { %v1460_v23 = vsel %vm1458_vm4, %v1457_v22, %v2225_v17  ;;  %v1459_v11 = vsel %vm1458_vm4, %v1456_v21, %v2224_v20 }
 0xb8e   : > { %v1461_v12 = vpack.c.bf16 %v1460_v23, %v1459_v11 }
 0xb90   : > { %2105 = vmatmul.mubr.bf16.vlgmr.msra.gmra.mxu0 %v1461_v12 }
 0xc50   : > { %v1567_v24 = vpop.f32.mrf.mxu0 }
 0xc51   : > { %v1568_v27 = vadd.f32 %v1891_v13, %v1567_v24 }
 0xc52   : > { %v2106_v29 = vpop.f32.mrf.mxu0 }
 0xc53   : > { %v1574_v48 = vadd.f32 %v1568_v27, %v2978_v18 }
 0xc54   : > { %v1570_v8 = vpop.f32.mrf.mxu0 }
 0xc55   : > { %v1571_v31 = vadd.f32 %v1891_v13, %v1570_v8  ;;  %1576 = vadd.xlane.f32.xlu0 %v1574_v48 }
 0xc56   : > { %v2107_v46 = vpop.f32.mrf.mxu0 }
 0xc57   : > { %v1575_v32 = vadd.f32 %v1571_v31, %v2982_v19 }
 0xc59   : > { %1578 = vadd.xlane.f32.xlu1 %v1575_v32 }
 0xc6a   : > { %2227 = vrot.lane.b32.xlu1 %v2226_v28, %s2600_s8 }
 0xc6e   : > { %2237 = vrot.lane.b32.xlu1 %v2236_v33, %s2601_s24 }
 0xcde   : > { %v1577_v52 = vpop.xlane.xlu0 %1576 }
 0xcdf   : > { %v1581_v5 = vmul.f32 0.0078125, %v1577_v52 }
 0xce1   : > { %v3195_v18 = vsub.f32 %v1574_v48, %v1581_v5 }
 0xce2   : > { %v1579_v6 = vpop.xlane.xlu1 %1578 }
 0xce3   : > { %v1582_v7 = vmul.f32 0.0078125, %v1579_v6  ;;  %v1585_v19 = vmul.f32 %v3195_v18, %v3195_v18 }
 0xce5   : > { %v3199_v37 = vsub.f32 %v1575_v32, %v1582_v7  ;;  %1587 = vadd.xlane.f32.xlu0 %v1585_v19 }
 0xce6   : > { %v2228_v28 = vpop.permute.xlu1 %2227 }
 0xce7   : > { %v1586_v25 = vmul.f32 %v3199_v37, %v3199_v37  ;;  %v2230_v10 = vunpack.i.h.bf16 %v2228_v28  ;;  %v2229_v39 = vunpack.i.l.bf16 %v2228_v28 }
 0xce9   : > { %1589 = vadd.xlane.f32.xlu0 %v1586_v25  ;;  %v1412_v63 = vsel %vm951_vm2, %v3063_v42, %v2230_v10  ;;  %v1411_v1 = vsel %vm951_vm2, %v3061_v41, %v2229_v39 }
 0xcea   : > { %v2238_v40 = vpop.permute.xlu1 %2237 }
 0xceb   : > { %v2239_v47 = vunpack.i.l.bf16 %v2238_v40 }
 0xcff   : > { %2232 = vrot.lane.b32.xlu0 %v2231_v3, %s2599_s25  ;;  %v2240_v3 = vunpack.i.h.bf16 %v2238_v40 }
 0xd6e   : > { %v1588_v26 = vpop.xlane.xlu0 %1587 }
 0xd6f   : > { %v1591_v57 = vmul.f32 0.0078125, %v1588_v26 }
 0xd71   : > { %v1593_v38 = vadd.f32 1e-05, %v1591_v57 }
 0xd72   : > { %v1590_v30 = vpop.xlane.xlu0 %1589 }
 0xd73   : > { %2307 = vrsqrt.f32 %v1593_v38  ;;  %v1592_v9 = vmul.f32 0.0078125, %v1590_v30 }
 0xd75   : > { %v1594_v43 = vadd.f32 1e-05, %v1592_v9 }
 0xd76   : > { %v2233_v44 = vpop.permute.xlu0 %2232 }
 0xd77   : > { %2309 = vrsqrt.f32 %v1594_v43  ;;  %v2235_v45 = vunpack.i.h.bf16 %v2233_v44  ;;  %v2234_v33 = vunpack.i.l.bf16 %v2233_v44 }
 0xd79   : > { %v1413_v49 = vsel %vm902_vm1, %v1411_v1, %v2234_v33  ;;  %v1414_v50 = vsel %vm902_vm1, %v1412_v63, %v2235_v45 }
 0xd7a   : > { %v1416_v51 = vsel %vm1415_vm5, %v1413_v49, %v2239_v47  ;;  %v1417_v53 = vsel %vm1415_vm5, %v1414_v50, %v2240_v3 }
 0xd7b   : > { %v1912_v42 = vpack.c.bf16 %v1416_v51, %v1416_v51  ;;  %v1913_v41 = vpack.c.bf16 %v1417_v53, %v1417_v53 }
 0xd7d   : > { %1427 = vst.msk [vmem:[%s507_s11] sm:$0xf] %vm1426_vm6, %v1912_v42  ;;  %1428 = vst.msk [vmem:[%s507_s11 + $0x4] sm:$0xf] %vm1426_vm6, %v1913_v41 }
 0xd7e   : > { %2488 = shalt.err (!%p2485_p4)
}
 0xd7f   : > { %s2489_s27 = scalar_lea.hbm %s3218_s30, 128  ;;  %s2493_s9 = scalar_lea.hbm %s3358_s20, 256 }
 0xd80   : > { %p2490_p2 = scmp.ne.s32.totalorder %s3218_s30, %s2489_s27  ;;  %p2494_p7 = scmp.lt.s32.totalorder %s3218_s30, %s3358_s20 }
 0xd81   : > { %p2495_p6 = scmp.lt.s32.totalorder %s2493_s9, %s2489_s27 }
 0xd82   : > { %p2491_p0 = pnand %p2490_p2, %p3359_p3 }
 0xd83   : > { %p2496_p13 = por %p2495_p6, %p2494_p7 }
 0xd84   : > { %p2492_p11 = pneg %p2491_p0 }
 0xd86   : > { %p2497_p1 = pnand %p2496_p13, %p2492_p11 }
 0xd88   : > { %2500 = shalt.err (!%p2497_p1)
}
 0xd89   : > { %s2603_s23 = smov 4   ;;  %v2308_v54 = vpop.eup %2307  ;;  %s1914_s11 = sshll.u32 %s2678_s13, 8 }
 0xd8a   : > { %2125 = dma.vmem_to_hbm [thread:$0]  (%p3359_p3), %s3220_s14, 128, %s3218_s30, %s1607_s22, %s2598_s17, %s2598_s17, %s2603_s23   ;;  %v1597_v55 = vmul.f32 %v2308_v54, %v3195_v18  ;;  %v2310_v56 = vpop.eup %2309 }
 0xd8b   : > { %s500_s29 = scalar_lea.vmem [#allocation13], %s2924_s3  ;;  %s3360_s15 = sld [smem:[#allocation30_spill]]  ;;  %v1598_v58 = vmul.f32 %v2310_v56, %v3199_v37 }
 0xd8c   : > { %s1620_s19 = sshll.u32 %s500_s29, 4  ;;  %1599 = vst [vmem:[%s500_s29] sm:$0xff] %v1597_v55  ;;  %s1602_s17 = scalar_lea.sflag [#allocation4], %s2921_s16  ;;  %s3255_s19 = int_to_ptr.vmem [resolvable:$true] %s1620_s19 }
 0xd8d   : > { %1600 = vst [vmem:[%s500_s29 + $0x8] sm:$0xff] %v1598_v58  ;;  %s2501_s14 = scalar_lea.vmem %s3255_s19, 256  ;;  %s2604_s13 = smov [#allocation13]  }
 0xd8e   : > { %p2502_p8 = scmp.ne.s32.totalorder %s3255_s19, %s2501_s14  ;;  %s2505_s3 = sshll.u32 %s2604_s13, 4  ;;  %s2506_s3 = int_to_ptr.vmem [resolvable:$false] %s2505_s3 }
 0xd8f   : > { %s2507_s30 = scalar_lea.vmem %s2506_s3, 512  ;;  %p2508_p5 = scmp.lt.s32.totalorder %s3255_s19, %s2506_s3 }
 0xd90   : > { %p2503_p9 = pnand %p2502_p8, %p3359_p3  ;;  %p2509_p12 = scmp.lt.s32.totalorder %s2507_s30, %s2501_s14 }
 0xd91   : > { %s3253_s18 = scalar_lea.hbm %s3360_s15, %s1914_s11 }
 0xd92   : > { %p2504_p10 = pneg %p2503_p9  ;;  %p2510_p4 = por %p2509_p12, %p2508_p5 }
 0xd94   : > { %p2511_p2 = pnand %p2510_p4, %p2504_p10 }
 0xd96   : > { %2514 = shalt.err (!%p2511_p2)
}
 0xd97   : > { %s2515_s22 = scalar_lea.hbm %s3253_s18, 256  ;;  %s2519_s21 = scalar_lea.hbm %s3360_s15, 512 }
 0xd98   : > { %p2516_p0 = scmp.ne.s32.totalorder %s3253_s18, %s2515_s22  ;;  %p2520_p6 = scmp.lt.s32.totalorder %s3253_s18, %s3360_s15 }
 0xd99   : > { %p2521_p13 = scmp.lt.s32.totalorder %s2519_s21, %s2515_s22 }
 0xd9a   : > { %p2517_p11 = pnand %p2516_p0, %p3359_p3 }
 0xd9b   : > { %p2522_p1 = por %p2521_p13, %p2520_p6 }
 0xd9c   : > { %p2518_p7 = pneg %p2517_p11 }
 0xd9e   : > { %p2523_p8 = pnand %p2522_p1, %p2518_p7 }
 0xda0   : > { %2526 = shalt.err (!%p2523_p8)
}
 0xda1   : > { %s2605_s24 = smov 128   ;;  %s2606_s23 = smov 8  }
 0xda2   : > { %2124 = dma.vmem_to_hbm [thread:$0]  (%p3359_p3), %s3255_s19, 256, %s3253_s18, %s1602_s17, %s2605_s24, %s2605_s24, %s2606_s23  }
 0xda3 PF: > { %s3361_s11 = sld [smem:[#allocation22_spill]]  ;;  %p3364_p10 = scmp.ge.s32.totalorder %s2581_s12, 2 }
 0xda4   : > { %s3362_s29 = sld [smem:[#allocation27_spill]] }
 0xda9   : > { %s1651_s1 = sand.u32 1, %s3361_s11  }
 0xdaa   : > { %p3363_p9 = scmp.ne.s32.totalorder %s3362_s29, 0  ;;  %s1652_s28 = scalar_lea.sflag [#allocation4], %s1651_s1 }
 0xdac   : > { %p2149_p5 = pnand %p3364_p10, %p3363_p9 }
 0xdae   : > { %p2150_p12 = pneg %p2149_p5 }
 0xdb0   : > { %2560 = dma.done.wait (%p2150_p12), %s1652_s28, 256  }
 0xdb1   : > { %2562 = vsyncadd (%p2150_p12), %s1652_s28, 4294967040  ;;  %s1661_s14 = scalar_lea.sflag [#allocation15], %s1651_s1 }
 0xdb2   : > { %2564 = dma.done.wait (%p2150_p12), %s1661_s14, 128  }
 0xdb3   : > { %2566 = vsyncadd (%p2150_p12), %s1661_s14, 4294967168  ;;  %s3365_s12 = sld [smem:[#allocation24_spill]]  ;;  %s3368_s30 = smov %s2573_s10 }
 0xdb4   : > { %s3366_s26 = sld [smem:[#allocation23_spill]] }
 0xdb5   : > { %s3367_s11 = sld [smem:[#allocation25_spill]] }
 0xdb9   : > { %p33_p3 = scmp.ge.s32.totalorder %s3365_s12, 4  }
 0xdba   : > { %s3369_s10 = smov %s3366_s26 }
 0xdbb   :  { %35 = sbr.rel (!%p33_p3) target bundleno = 17 (0x11), region = 159 }
 0xdc0   :  { %1666 = vsyncpa [#allocation3], 1 }
 0xdc1   :  { %1668 = vsyncpa [#allocation3 + $0x1], 1 }
 0xdc2   :  { %1669 = vsyncpa [#allocation6], 1 }
 0xdc3   :  { %1671 = vsyncpa [#allocation6 + $0x1], 1 }
 0xdc4   :  { %1672 = vsyncpa [#allocation9], 1 }
 0xdc5   :  { %1673 = vsyncpa [#allocation12], 1 }
 0xdc6   :  { %1675 = vsyncpa [#allocation12 + $0x1], 1 }
 0xdc7   :  { %1676 = vsyncpa [#allocation4], 1 }
 0xdc8   :  { %1678 = vsyncpa [#allocation4 + $0x1], 1 }
 0xdc9   :  { %1679 = vsyncpa [#allocation15], 1 }
 0xdca   :  { %1681 = vsyncpa [#allocation15 + $0x1], 1 }

</bundles_post_ra>
